<compile_context>
chip_gen: v5e
topology: v5e:2x2
jax: 0.10.0
libtpu: 0.0.40
codegen_flags: <defaults>
</compile_context>

<pallas_src>
import functools

import jax
import jax.numpy as jnp
from jax.experimental import pallas as pl
from jax.experimental.pallas import tpu as pltpu

KERNEL_SIZE = 3
NUM_INPUTS = 12
NUM_CHANNELS = [12, 64, 128]

_TARGET_M_ROWS = 256            # fill the 256-row v6e/v7x MXU (>=128 for v5e)
_VMEM_BYTES_PER_ROW = 6 * 1024  # live activations + im2col + padded transpose + IO


def _vmem_capacity_bytes():
    try:
        return int(pltpu.get_tpu_info().vmem_capacity_bytes)
    except Exception:                       # conservative (v7x-sized) fallback
        return 64 * 1024 * 1024


def _choose_batch_tile(batch, seq_len, vmem_cap):
    """Largest divisor of `batch` whose TB*L rows fit the VMEM row budget,
    stopping once the MXU M-dimension target is reached."""
    max_rows = max((vmem_cap // 2) // _VMEM_BYTES_PER_ROW, seq_len)
    tile = 1
    for cand in range(1, batch + 1):
        if batch % cand:
            continue
        rows = cand * seq_len
        if cand > 1 and rows > max_rows:
            break
        if cand != batch and rows % 8:      # keep the (8,128) sublane constraint
            continue
        tile = cand
        if rows >= _TARGET_M_ROWS:
            break
    return tile


def _fused_tcn_kernel(x_ref, row_t_ref, *refs, layer_meta, k_size, seq_len,
                      batch_tile):
    """Fused forward of all TemporalBlocks for one batch tile.

    x_ref     : (TB*L, C_in) f32 input, batch*time packed on the sublane axis.
    row_t_ref : (TB*L, 1) i32 time index of each packed row within its batch
                element (for causal masking of the rolled taps).
    refs      : per-layer [rhs1, bias1, w2c, b2] ..., then o_ref (TB, C_last, L).
                rhs1 is conv1's (K*Cin, Cout) weight, widened to (K*Cin, 2*Cout)
                with the 1x1 downsample placed in the shift-0 tap rows for
                layers that change channel count, so one MXU push yields
                [conv1_preact | residual_preact].
    """
    o_ref = refs[-1]
    w_refs = refs[:-1]

    a = x_ref[...]                                    # (rows, C_in) f32
    row_t = row_t_ref[...]                            # (rows, 1) i32
    rows = a.shape[0]

    def causal_taps(v, dilation):
        # v: (rows, C) f32 -> (rows, K*C) bf16 im2col of the K causal taps.
        # Tap k is v delayed by s=(K-1-k)*dilation steps: an XLU sublane roll
        # plus a row mask (rows with t < s have no history -> zero), which also
        # zeroes anything rolled across a batch boundary.
        cols = []
        for k in range(k_size):
            s = (k_size - 1 - k) * dilation
            if s == 0:
                tap = v
            elif s >= seq_len:                        # receptive field > sequence
                tap = jnp.zeros_like(v)
            else:
                rolled = pltpu.roll(v, shift=s, axis=0)
                tap = jnp.where(row_t >= s, rolled, 0.0)
            cols.append(tap.astype(jnp.bfloat16))     # cast before lane concat
        return jnp.concatenate(cols, axis=1)

    idx = 0
    for dilation, has_ds, cout in layer_meta:
        rhs1 = w_refs[idx]
        bias1 = w_refs[idx + 1]
        w2 = w_refs[idx + 2]
        b2 = w_refs[idx + 3]
        idx += 4

        # conv1 (+ fused residual 1x1 when channel count changes): one matmul.
        pre = jnp.dot(causal_taps(a, dilation), rhs1[...],
                      preferred_element_type=jnp.float32) + bias1[...]
        if has_ds:
            h = jnp.maximum(pre[:, :cout], 0.0)       # ReLU(conv1)
            res = pre[:, cout:]                       # downsample(x), no ReLU
        else:
            h = jnp.maximum(pre, 0.0)
            res = a                                   # identity residual

        # conv2 + ReLU (dropout2 = identity at inference), then residual ReLU.
        o = jnp.maximum(
            jnp.dot(causal_taps(h, dilation), w2[...],
                    preferred_element_type=jnp.float32) + b2[...], 0.0)
        a = jnp.maximum(o + res, 0.0)

    # Store NCW directly: zero-pad rows to a lane multiple so the on-chip
    # transpose stays on full native (8,128) tiles, transpose once, and write
    # one (C_last, L) slab per batch element in the tile.
    c_last = a.shape[1]
    rows_p = ((rows + 127) // 128) * 128
    if rows_p != rows:
        a = jnp.concatenate(
            [a, jnp.zeros((rows_p - rows, c_last), a.dtype)], axis=0)
    a_t = jnp.transpose(a)                            # (C_last, rows_p)
    for b in range(batch_tile):
        o_ref[b] = a_t[:, b * seq_len:(b + 1) * seq_len].astype(o_ref.dtype)


def _pack_layer_weights(params, k_size):
    """Pre-pack per-layer weights (bf16 MXU inputs, f32 biases).

    conv1 weight (K, Cin, Cout) -> (K*Cin, Cout) tap-major.  For layers with a
    downsample, the 1x1 weight is placed in the shift-0 tap rows of extra
    output columns so conv1 and the residual share one matmul; their biases are
    concatenated the same way.
    """
    operands, meta = [], []
    for i, (w1, b1, w2, b2, wd, bd) in enumerate(params):
        dilation = 2 ** i
        cin, cout = w1.shape[1], w1.shape[2]
        w1c = w1.reshape(k_size * cin, cout)
        has_ds = wd is not None
        if has_ds:
            wd_pad = jnp.zeros((k_size * cin, cout), w1.dtype)
            wd_pad = wd_pad.at[(k_size - 1) * cin:].set(wd)
            rhs1 = jnp.concatenate([w1c, wd_pad], axis=1).astype(jnp.bfloat16)
            bias1 = jnp.concatenate([b1, bd], axis=1)
        else:
            rhs1 = w1c.astype(jnp.bfloat16)
            bias1 = b1
        w2c = w2.reshape(k_size * cout, cout).astype(jnp.bfloat16)
        operands += [rhs1, bias1, w2c, b2]
        meta.append((dilation, has_ds, cout))
    return operands, tuple(meta)


def temporal_conv_net(x_ncw, params, k_size=KERNEL_SIZE):
    """Matches TemporalConvNet.forward: (B, C_in, L) -> (B, C_last, L)."""
    batch, c_in, seq_len = x_ncw.shape
    c_last = params[-1][0].shape[2]

    # NCW -> packed (B*L, C_in) rows.  This input transpose is tiny (12 ch);
    # the large 128-channel output is written NCW directly by the kernel.
    x = jnp.transpose(x_ncw, (0, 2, 1)).astype(jnp.float32)
    x = x.reshape(batch * seq_len, c_in)

    w_ops, layer_meta = _pack_layer_weights(params, k_size)

    vmem_cap = _vmem_capacity_bytes()
    batch_tile = _choose_batch_tile(batch, seq_len, vmem_cap)
    rows = batch_tile * seq_len

    # Within-batch time index of every packed row (same pattern for every tile).
    row_t = jnp.tile(jnp.arange(seq_len, dtype=jnp.int32),
                     batch_tile).reshape(rows, 1)

    in_specs = [pl.BlockSpec((rows, c_in), lambda i: (i, 0)),
                pl.BlockSpec((rows, 1), lambda i: (0, 0))]
    for op in w_ops:
        in_specs.append(pl.BlockSpec(op.shape, lambda i: (0, 0)))

    kernel = functools.partial(
        _fused_tcn_kernel, layer_meta=layer_meta, k_size=k_size,
        seq_len=seq_len, batch_tile=batch_tile)

    return pl.pallas_call(
        kernel,
        out_shape=jax.ShapeDtypeStruct((batch, c_last, seq_len), jnp.float32),
        grid=(batch // batch_tile,),
        in_specs=in_specs,
        out_specs=pl.BlockSpec((batch_tile, c_last, seq_len),
                               lambda i: (i, 0, 0)),
        compiler_params=pltpu.CompilerParams(
            dimension_semantics=("parallel",),
            vmem_limit_bytes=min((vmem_cap * 3) // 4, 96 * 1024 * 1024)),
    )(x, row_t, *w_ops)


def init_params(key, num_inputs=NUM_INPUTS, num_channels=NUM_CHANNELS,
                k_size=KERNEL_SIZE):
    """Deterministic synthetic weights, N(0, 0.01) like init_weights().

    Weight-norm reduces to an effective (Cout, Cin, K) weight at inference; we
    generate that effective weight directly, stored as (K, Cin, Cout) for the
    (time, channel) layout.  wd/bd are None when Cin == Cout (downsample=None).
    """
    params = []
    in_c = num_inputs
    for out_c in num_channels:
        key, *ks = jax.random.split(key, 7)
        w1 = 0.01 * jax.random.normal(ks[0], (k_size, in_c, out_c), jnp.float32)
        b1 = 0.01 * jax.random.normal(ks[1], (1, out_c), jnp.float32)
        w2 = 0.01 * jax.random.normal(ks[2], (k_size, out_c, out_c), jnp.float32)
        b2 = 0.01 * jax.random.normal(ks[3], (1, out_c), jnp.float32)
        if in_c != out_c:
            wd = 0.01 * jax.random.normal(ks[4], (in_c, out_c), jnp.float32)
            bd = 0.01 * jax.random.normal(ks[5], (1, out_c), jnp.float32)
        else:                       # downsample is None -> identity residual
            wd, bd = None, None
        params.append((w1, b1, w2, b2, wd, bd))
        in_c = out_c
    return params


# -------- pure-JAX reference (same bf16-in / f32-accumulate recipe) ----------
def _block_ref(x, p, dilation, k_size=KERNEL_SIZE):
    w1, b1, w2, b2, wd, bd = p
    P = (k_size - 1) * dilation
    L = x.shape[1]

    def cconv(inp, w, b):
        ip = jnp.pad(inp.astype(jnp.bfloat16), ((0, 0), (P, 0), (0, 0)))
        acc = jnp.zeros(inp.shape[:2] + (w.shape[2],), jnp.float32)
        for k in range(k_size):
            acc = acc + jnp.einsum(
                'blc,cd->bld', ip[:, k * dilation: k * dilation + L, :],
                w[k].astype(jnp.bfloat16), preferred_element_type=jnp.float32)
        return acc + b[0]

    h = jnp.maximum(cconv(x, w1, b1), 0.0)
    o = jnp.maximum(cconv(h, w2, b2), 0.0)
    if wd is None:
        res = x
    else:
        res = jnp.einsum('blc,cd->bld', x.astype(jnp.bfloat16),
                         wd.astype(jnp.bfloat16),
                         preferred_element_type=jnp.float32) + bd[0]
    return jnp.maximum(o + res, 0.0)


def temporal_conv_net_ref(x_ncw, params, k_size=KERNEL_SIZE):
    x = jnp.transpose(x_ncw, (0, 2, 1)).astype(jnp.float32)
    for i, p in enumerate(params):
        x = _block_ref(x, p, 2 ** i, k_size)
    return jnp.transpose(x, (0, 2, 1))


if __name__ == "__main__":
    key = jax.random.PRNGKey(0)
    k_x, k_w = jax.random.split(key)

    B, C, L = 2, NUM_INPUTS, 16              # small NCW input (2, 12, 16)
    x = jax.random.normal(k_x, (B, C, L), jnp.float32)
    params = init_params(k_w)

    out = jax.jit(temporal_conv_net)(x, params)
    out = jax.block_until_ready(out)

    ref = temporal_conv_net_ref(x, params)
    assert out.shape == (B, NUM_CHANNELS[-1], L), out.shape
    # Tolerance covers f32 summation-order differences between the fused
    # single-matmul kernel and the per-tap reference (both use bf16 MXU inputs
    # with f32 accumulation); any plumbing bug would be orders larger.
    assert jnp.allclose(out, ref, atol=3e-4, rtol=3e-3), \
        float(jnp.max(jnp.abs(out - ref)))

    print("KERNEL_OK")
</pallas_src>

<mosaic_0001>
module attributes {stable_mosaic.version = 11 : i64} {
  func.func @_fused_tcn_kernel(%arg0: i32, %arg1: memref<32x12xf32, #tpu.memory_space<vmem>>, %arg2: memref<32x1xi32, #tpu.memory_space<vmem>>, %arg3: memref<36x12xbf16, #tpu.memory_space<vmem>>, %arg4: memref<1x12xf32, #tpu.memory_space<vmem>>, %arg5: memref<36x12xbf16, #tpu.memory_space<vmem>>, %arg6: memref<1x12xf32, #tpu.memory_space<vmem>>, %arg7: memref<36x128xbf16, #tpu.memory_space<vmem>>, %arg8: memref<1x128xf32, #tpu.memory_space<vmem>>, %arg9: memref<192x64xbf16, #tpu.memory_space<vmem>>, %arg10: memref<1x64xf32, #tpu.memory_space<vmem>>, %arg11: memref<192x256xbf16, #tpu.memory_space<vmem>>, %arg12: memref<1x256xf32, #tpu.memory_space<vmem>>, %arg13: memref<384x128xbf16, #tpu.memory_space<vmem>>, %arg14: memref<1x128xf32, #tpu.memory_space<vmem>>, %arg15: memref<2x128x16xf32, #tpu.memory_space<vmem>>) attributes {dimension_semantics = [#tpu.dimension_semantics<parallel>], iteration_bounds = array<i64: 1>, scalar_prefetch = 0 : i64, scratch_operands = 0 : i64, tpu.core_type = #tpu.core_type<tc>, window_params = [{transform_indices = @transform_0, window_bounds = array<i64: 32, 12>}, {pipeline_mode = #tpu.pipeline_mode<synchronous>, transform_indices = @transform_1, window_bounds = array<i64: 32, 1>}, {pipeline_mode = #tpu.pipeline_mode<synchronous>, transform_indices = @transform_2, window_bounds = array<i64: 36, 12>}, {pipeline_mode = #tpu.pipeline_mode<synchronous>, transform_indices = @transform_3, window_bounds = array<i64: 1, 12>}, {pipeline_mode = #tpu.pipeline_mode<synchronous>, transform_indices = @transform_4, window_bounds = array<i64: 36, 12>}, {pipeline_mode = #tpu.pipeline_mode<synchronous>, transform_indices = @transform_5, window_bounds = array<i64: 1, 12>}, {pipeline_mode = #tpu.pipeline_mode<synchronous>, transform_indices = @transform_6, window_bounds = array<i64: 36, 128>}, {pipeline_mode = #tpu.pipeline_mode<synchronous>, transform_indices = @transform_7, window_bounds = array<i64: 1, 128>}, {pipeline_mode = #tpu.pipeline_mode<synchronous>, transform_indices = @transform_8, window_bounds = array<i64: 192, 64>}, {pipeline_mode = #tpu.pipeline_mode<synchronous>, transform_indices = @transform_9, window_bounds = array<i64: 1, 64>}, {pipeline_mode = #tpu.pipeline_mode<synchronous>, transform_indices = @transform_10, window_bounds = array<i64: 192, 256>}, {pipeline_mode = #tpu.pipeline_mode<synchronous>, transform_indices = @transform_11, window_bounds = array<i64: 1, 256>}, {pipeline_mode = #tpu.pipeline_mode<synchronous>, transform_indices = @transform_12, window_bounds = array<i64: 384, 128>}, {pipeline_mode = #tpu.pipeline_mode<synchronous>, transform_indices = @transform_13, window_bounds = array<i64: 1, 128>}, {transform_indices = @transform_14, window_bounds = array<i64: 2, 128, 16>}]} {
    %c0 = arith.constant 0 : index
    %c0_0 = arith.constant 0 : index
    %0 = vector.load %arg1[%c0, %c0_0] : memref<32x12xf32, #tpu.memory_space<vmem>>, vector<32x12xf32>
    %c0_1 = arith.constant 0 : index
    %c0_2 = arith.constant 0 : index
    %1 = vector.load %arg2[%c0_1, %c0_2] : memref<32x1xi32, #tpu.memory_space<vmem>>, vector<32x1xi32>
    %c2_i32 = arith.constant 2 : i32
    %2 = tpu.dynamic_rotate %0 by %c2_i32 dim 0 : vector<32x12xf32>, i32 -> vector<32x12xf32>
    %c2_i32_3 = arith.constant 2 : i32
    %3 = vector.broadcast %c2_i32_3 : i32 to vector<32x1xi32>
    %4 = arith.cmpi sge, %1, %3 : vector<32x1xi32>
    %cst = arith.constant 0.000000e+00 : f32
    %5 = vector.shape_cast %4 : vector<32x1xi1> to vector<32x1xi1>
    %6 = vector.broadcast %5 : vector<32x1xi1> to vector<32x12xi1>
    %7 = vector.broadcast %cst : f32 to vector<32x12xf32>
    %8 = arith.select %6, %2, %7 : vector<32x12xi1>, vector<32x12xf32>
    %9 = arith.truncf %8 : vector<32x12xf32> to vector<32x12xbf16>
    %c1_i32 = arith.constant 1 : i32
    %10 = tpu.dynamic_rotate %0 by %c1_i32 dim 0 : vector<32x12xf32>, i32 -> vector<32x12xf32>
    %c1_i32_4 = arith.constant 1 : i32
    %11 = vector.broadcast %c1_i32_4 : i32 to vector<32x1xi32>
    %12 = arith.cmpi sge, %1, %11 : vector<32x1xi32>
    %cst_5 = arith.constant 0.000000e+00 : f32
    %13 = vector.shape_cast %12 : vector<32x1xi1> to vector<32x1xi1>
    %14 = vector.broadcast %13 : vector<32x1xi1> to vector<32x12xi1>
    %15 = vector.broadcast %cst_5 : f32 to vector<32x12xf32>
    %16 = arith.select %14, %10, %15 : vector<32x12xi1>, vector<32x12xf32>
    %17 = arith.truncf %16 : vector<32x12xf32> to vector<32x12xbf16>
    %18 = arith.truncf %0 : vector<32x12xf32> to vector<32x12xbf16>
    %19 = tpu.concatenate %9, %17, %18 in 1 : vector<32x12xbf16>, vector<32x12xbf16>, vector<32x12xbf16> -> vector<32x36xbf16>
    %c0_6 = arith.constant 0 : index
    %c0_7 = arith.constant 0 : index
    %20 = vector.load %arg3[%c0_6, %c0_7] : memref<36x12xbf16, #tpu.memory_space<vmem>>, vector<36x12xbf16>
    %cst_8 = arith.constant dense<0.000000e+00> : vector<32x12xf32>
    %21 = tpu.matmul %19, %20, %cst_8 {dimension_numbers = #tpu.dot_dimension_numbers<[1], [0], [0], [1], [0, 0, 1, 1], [], []>} : vector<32x36xbf16>, vector<36x12xbf16>, vector<32x12xf32> -> vector<32x12xf32>
    %c0_9 = arith.constant 0 : index
    %c0_10 = arith.constant 0 : index
    %22 = vector.load %arg4[%c0_9, %c0_10] : memref<1x12xf32, #tpu.memory_space<vmem>>, vector<1x12xf32>
    %23 = vector.broadcast %22 : vector<1x12xf32> to vector<32x12xf32>
    %24 = arith.addf %21, %23 : vector<32x12xf32>
    %cst_11 = arith.constant 0.000000e+00 : f32
    %25 = vector.broadcast %cst_11 : f32 to vector<32x12xf32>
    %26 = arith.maximumf %24, %25 : vector<32x12xf32>
    %c2_i32_12 = arith.constant 2 : i32
    %27 = tpu.dynamic_rotate %26 by %c2_i32_12 dim 0 : vector<32x12xf32>, i32 -> vector<32x12xf32>
    %c2_i32_13 = arith.constant 2 : i32
    %28 = vector.broadcast %c2_i32_13 : i32 to vector<32x1xi32>
    %29 = arith.cmpi sge, %1, %28 : vector<32x1xi32>
    %cst_14 = arith.constant 0.000000e+00 : f32
    %30 = vector.shape_cast %29 : vector<32x1xi1> to vector<32x1xi1>
    %31 = vector.broadcast %30 : vector<32x1xi1> to vector<32x12xi1>
    %32 = vector.broadcast %cst_14 : f32 to vector<32x12xf32>
    %33 = arith.select %31, %27, %32 : vector<32x12xi1>, vector<32x12xf32>
    %34 = arith.truncf %33 : vector<32x12xf32> to vector<32x12xbf16>
    %c1_i32_15 = arith.constant 1 : i32
    %35 = tpu.dynamic_rotate %26 by %c1_i32_15 dim 0 : vector<32x12xf32>, i32 -> vector<32x12xf32>
    %c1_i32_16 = arith.constant 1 : i32
    %36 = vector.broadcast %c1_i32_16 : i32 to vector<32x1xi32>
    %37 = arith.cmpi sge, %1, %36 : vector<32x1xi32>
    %cst_17 = arith.constant 0.000000e+00 : f32
    %38 = vector.shape_cast %37 : vector<32x1xi1> to vector<32x1xi1>
    %39 = vector.broadcast %38 : vector<32x1xi1> to vector<32x12xi1>
    %40 = vector.broadcast %cst_17 : f32 to vector<32x12xf32>
    %41 = arith.select %39, %35, %40 : vector<32x12xi1>, vector<32x12xf32>
    %42 = arith.truncf %41 : vector<32x12xf32> to vector<32x12xbf16>
    %43 = arith.truncf %26 : vector<32x12xf32> to vector<32x12xbf16>
    %44 = tpu.concatenate %34, %42, %43 in 1 : vector<32x12xbf16>, vector<32x12xbf16>, vector<32x12xbf16> -> vector<32x36xbf16>
    %c0_18 = arith.constant 0 : index
    %c0_19 = arith.constant 0 : index
    %45 = vector.load %arg5[%c0_18, %c0_19] : memref<36x12xbf16, #tpu.memory_space<vmem>>, vector<36x12xbf16>
    %cst_20 = arith.constant dense<0.000000e+00> : vector<32x12xf32>
    %46 = tpu.matmul %44, %45, %cst_20 {dimension_numbers = #tpu.dot_dimension_numbers<[1], [0], [0], [1], [0, 0, 1, 1], [], []>} : vector<32x36xbf16>, vector<36x12xbf16>, vector<32x12xf32> -> vector<32x12xf32>
    %c0_21 = arith.constant 0 : index
    %c0_22 = arith.constant 0 : index
    %47 = vector.load %arg6[%c0_21, %c0_22] : memref<1x12xf32, #tpu.memory_space<vmem>>, vector<1x12xf32>
    %48 = vector.broadcast %47 : vector<1x12xf32> to vector<32x12xf32>
    %49 = arith.addf %46, %48 : vector<32x12xf32>
    %cst_23 = arith.constant 0.000000e+00 : f32
    %50 = vector.broadcast %cst_23 : f32 to vector<32x12xf32>
    %51 = arith.maximumf %49, %50 : vector<32x12xf32>
    %52 = arith.addf %51, %0 : vector<32x12xf32>
    %cst_24 = arith.constant 0.000000e+00 : f32
    %53 = vector.broadcast %cst_24 : f32 to vector<32x12xf32>
    %54 = arith.maximumf %52, %53 : vector<32x12xf32>
    %c4_i32 = arith.constant 4 : i32
    %55 = tpu.dynamic_rotate %54 by %c4_i32 dim 0 : vector<32x12xf32>, i32 -> vector<32x12xf32>
    %c4_i32_25 = arith.constant 4 : i32
    %56 = vector.broadcast %c4_i32_25 : i32 to vector<32x1xi32>
    %57 = arith.cmpi sge, %1, %56 : vector<32x1xi32>
    %cst_26 = arith.constant 0.000000e+00 : f32
    %58 = vector.shape_cast %57 : vector<32x1xi1> to vector<32x1xi1>
    %59 = vector.broadcast %58 : vector<32x1xi1> to vector<32x12xi1>
    %60 = vector.broadcast %cst_26 : f32 to vector<32x12xf32>
    %61 = arith.select %59, %55, %60 : vector<32x12xi1>, vector<32x12xf32>
    %62 = arith.truncf %61 : vector<32x12xf32> to vector<32x12xbf16>
    %c2_i32_27 = arith.constant 2 : i32
    %63 = tpu.dynamic_rotate %54 by %c2_i32_27 dim 0 : vector<32x12xf32>, i32 -> vector<32x12xf32>
    %c2_i32_28 = arith.constant 2 : i32
    %64 = vector.broadcast %c2_i32_28 : i32 to vector<32x1xi32>
    %65 = arith.cmpi sge, %1, %64 : vector<32x1xi32>
    %cst_29 = arith.constant 0.000000e+00 : f32
    %66 = vector.shape_cast %65 : vector<32x1xi1> to vector<32x1xi1>
    %67 = vector.broadcast %66 : vector<32x1xi1> to vector<32x12xi1>
    %68 = vector.broadcast %cst_29 : f32 to vector<32x12xf32>
    %69 = arith.select %67, %63, %68 : vector<32x12xi1>, vector<32x12xf32>
    %70 = arith.truncf %69 : vector<32x12xf32> to vector<32x12xbf16>
    %71 = arith.truncf %54 : vector<32x12xf32> to vector<32x12xbf16>
    %72 = tpu.concatenate %62, %70, %71 in 1 : vector<32x12xbf16>, vector<32x12xbf16>, vector<32x12xbf16> -> vector<32x36xbf16>
    %c0_30 = arith.constant 0 : index
    %c0_31 = arith.constant 0 : index
    %73 = vector.load %arg7[%c0_30, %c0_31] : memref<36x128xbf16, #tpu.memory_space<vmem>>, vector<36x128xbf16>
    %cst_32 = arith.constant dense<0.000000e+00> : vector<32x128xf32>
    %74 = tpu.matmul %72, %73, %cst_32 {dimension_numbers = #tpu.dot_dimension_numbers<[1], [0], [0], [1], [0, 0, 1, 1], [], []>} : vector<32x36xbf16>, vector<36x128xbf16>, vector<32x128xf32> -> vector<32x128xf32>
    %c0_33 = arith.constant 0 : index
    %c0_34 = arith.constant 0 : index
    %75 = vector.load %arg8[%c0_33, %c0_34] : memref<1x128xf32, #tpu.memory_space<vmem>>, vector<1x128xf32>
    %76 = vector.broadcast %75 : vector<1x128xf32> to vector<32x128xf32>
    %77 = arith.addf %74, %76 : vector<32x128xf32>
    %78 = vector.extract_strided_slice %77 {offsets = [0, 0], sizes = [32, 64], strides = [1, 1]} : vector<32x128xf32> to vector<32x64xf32>
    %cst_35 = arith.constant 0.000000e+00 : f32
    %79 = vector.broadcast %cst_35 : f32 to vector<32x64xf32>
    %80 = arith.maximumf %78, %79 : vector<32x64xf32>
    %81 = vector.extract_strided_slice %77 {offsets = [0, 64], sizes = [32, 64], strides = [1, 1]} : vector<32x128xf32> to vector<32x64xf32>
    %c4_i32_36 = arith.constant 4 : i32
    %82 = tpu.dynamic_rotate %80 by %c4_i32_36 dim 0 : vector<32x64xf32>, i32 -> vector<32x64xf32>
    %c4_i32_37 = arith.constant 4 : i32
    %83 = vector.broadcast %c4_i32_37 : i32 to vector<32x1xi32>
    %84 = arith.cmpi sge, %1, %83 : vector<32x1xi32>
    %cst_38 = arith.constant 0.000000e+00 : f32
    %85 = vector.shape_cast %84 : vector<32x1xi1> to vector<32x1xi1>
    %86 = vector.broadcast %85 : vector<32x1xi1> to vector<32x64xi1>
    %87 = vector.broadcast %cst_38 : f32 to vector<32x64xf32>
    %88 = arith.select %86, %82, %87 : vector<32x64xi1>, vector<32x64xf32>
    %89 = arith.truncf %88 : vector<32x64xf32> to vector<32x64xbf16>
    %c2_i32_39 = arith.constant 2 : i32
    %90 = tpu.dynamic_rotate %80 by %c2_i32_39 dim 0 : vector<32x64xf32>, i32 -> vector<32x64xf32>
    %c2_i32_40 = arith.constant 2 : i32
    %91 = vector.broadcast %c2_i32_40 : i32 to vector<32x1xi32>
    %92 = arith.cmpi sge, %1, %91 : vector<32x1xi32>
    %cst_41 = arith.constant 0.000000e+00 : f32
    %93 = vector.shape_cast %92 : vector<32x1xi1> to vector<32x1xi1>
    %94 = vector.broadcast %93 : vector<32x1xi1> to vector<32x64xi1>
    %95 = vector.broadcast %cst_41 : f32 to vector<32x64xf32>
    %96 = arith.select %94, %90, %95 : vector<32x64xi1>, vector<32x64xf32>
    %97 = arith.truncf %96 : vector<32x64xf32> to vector<32x64xbf16>
    %98 = arith.truncf %80 : vector<32x64xf32> to vector<32x64xbf16>
    %99 = tpu.concatenate %89, %97, %98 in 1 : vector<32x64xbf16>, vector<32x64xbf16>, vector<32x64xbf16> -> vector<32x192xbf16>
    %c0_42 = arith.constant 0 : index
    %c0_43 = arith.constant 0 : index
    %100 = vector.load %arg9[%c0_42, %c0_43] : memref<192x64xbf16, #tpu.memory_space<vmem>>, vector<192x64xbf16>
    %cst_44 = arith.constant dense<0.000000e+00> : vector<32x64xf32>
    %101 = tpu.matmul %99, %100, %cst_44 {dimension_numbers = #tpu.dot_dimension_numbers<[1], [0], [0], [1], [0, 0, 1, 1], [], []>} : vector<32x192xbf16>, vector<192x64xbf16>, vector<32x64xf32> -> vector<32x64xf32>
    %c0_45 = arith.constant 0 : index
    %c0_46 = arith.constant 0 : index
    %102 = vector.load %arg10[%c0_45, %c0_46] : memref<1x64xf32, #tpu.memory_space<vmem>>, vector<1x64xf32>
    %103 = vector.broadcast %102 : vector<1x64xf32> to vector<32x64xf32>
    %104 = arith.addf %101, %103 : vector<32x64xf32>
    %cst_47 = arith.constant 0.000000e+00 : f32
    %105 = vector.broadcast %cst_47 : f32 to vector<32x64xf32>
    %106 = arith.maximumf %104, %105 : vector<32x64xf32>
    %107 = arith.addf %106, %81 : vector<32x64xf32>
    %cst_48 = arith.constant 0.000000e+00 : f32
    %108 = vector.broadcast %cst_48 : f32 to vector<32x64xf32>
    %109 = arith.maximumf %107, %108 : vector<32x64xf32>
    %c8_i32 = arith.constant 8 : i32
    %110 = tpu.dynamic_rotate %109 by %c8_i32 dim 0 : vector<32x64xf32>, i32 -> vector<32x64xf32>
    %c8_i32_49 = arith.constant 8 : i32
    %111 = vector.broadcast %c8_i32_49 : i32 to vector<32x1xi32>
    %112 = arith.cmpi sge, %1, %111 : vector<32x1xi32>
    %cst_50 = arith.constant 0.000000e+00 : f32
    %113 = vector.shape_cast %112 : vector<32x1xi1> to vector<32x1xi1>
    %114 = vector.broadcast %113 : vector<32x1xi1> to vector<32x64xi1>
    %115 = vector.broadcast %cst_50 : f32 to vector<32x64xf32>
    %116 = arith.select %114, %110, %115 : vector<32x64xi1>, vector<32x64xf32>
    %117 = arith.truncf %116 : vector<32x64xf32> to vector<32x64xbf16>
    %c4_i32_51 = arith.constant 4 : i32
    %118 = tpu.dynamic_rotate %109 by %c4_i32_51 dim 0 : vector<32x64xf32>, i32 -> vector<32x64xf32>
    %c4_i32_52 = arith.constant 4 : i32
    %119 = vector.broadcast %c4_i32_52 : i32 to vector<32x1xi32>
    %120 = arith.cmpi sge, %1, %119 : vector<32x1xi32>
    %cst_53 = arith.constant 0.000000e+00 : f32
    %121 = vector.shape_cast %120 : vector<32x1xi1> to vector<32x1xi1>
    %122 = vector.broadcast %121 : vector<32x1xi1> to vector<32x64xi1>
    %123 = vector.broadcast %cst_53 : f32 to vector<32x64xf32>
    %124 = arith.select %122, %118, %123 : vector<32x64xi1>, vector<32x64xf32>
    %125 = arith.truncf %124 : vector<32x64xf32> to vector<32x64xbf16>
    %126 = arith.truncf %109 : vector<32x64xf32> to vector<32x64xbf16>
    %127 = tpu.concatenate %117, %125, %126 in 1 : vector<32x64xbf16>, vector<32x64xbf16>, vector<32x64xbf16> -> vector<32x192xbf16>
    %c0_54 = arith.constant 0 : index
    %c0_55 = arith.constant 0 : index
    %128 = vector.load %arg11[%c0_54, %c0_55] : memref<192x256xbf16, #tpu.memory_space<vmem>>, vector<192x256xbf16>
    %cst_56 = arith.constant dense<0.000000e+00> : vector<32x256xf32>
    %129 = tpu.matmul %127, %128, %cst_56 {dimension_numbers = #tpu.dot_dimension_numbers<[1], [0], [0], [1], [0, 0, 1, 1], [], []>} : vector<32x192xbf16>, vector<192x256xbf16>, vector<32x256xf32> -> vector<32x256xf32>
    %c0_57 = arith.constant 0 : index
    %c0_58 = arith.constant 0 : index
    %130 = vector.load %arg12[%c0_57, %c0_58] : memref<1x256xf32, #tpu.memory_space<vmem>>, vector<1x256xf32>
    %131 = vector.broadcast %130 : vector<1x256xf32> to vector<32x256xf32>
    %132 = arith.addf %129, %131 : vector<32x256xf32>
    %133 = vector.extract_strided_slice %132 {offsets = [0, 0], sizes = [32, 128], strides = [1, 1]} : vector<32x256xf32> to vector<32x128xf32>
    %cst_59 = arith.constant 0.000000e+00 : f32
    %134 = vector.broadcast %cst_59 : f32 to vector<32x128xf32>
    %135 = arith.maximumf %133, %134 : vector<32x128xf32>
    %136 = vector.extract_strided_slice %132 {offsets = [0, 128], sizes = [32, 128], strides = [1, 1]} : vector<32x256xf32> to vector<32x128xf32>
    %c8_i32_60 = arith.constant 8 : i32
    %137 = tpu.dynamic_rotate %135 by %c8_i32_60 dim 0 : vector<32x128xf32>, i32 -> vector<32x128xf32>
    %c8_i32_61 = arith.constant 8 : i32
    %138 = vector.broadcast %c8_i32_61 : i32 to vector<32x1xi32>
    %139 = arith.cmpi sge, %1, %138 : vector<32x1xi32>
    %cst_62 = arith.constant 0.000000e+00 : f32
    %140 = vector.shape_cast %139 : vector<32x1xi1> to vector<32x1xi1>
    %141 = vector.broadcast %140 : vector<32x1xi1> to vector<32x128xi1>
    %142 = vector.broadcast %cst_62 : f32 to vector<32x128xf32>
    %143 = arith.select %141, %137, %142 : vector<32x128xi1>, vector<32x128xf32>
    %144 = arith.truncf %143 : vector<32x128xf32> to vector<32x128xbf16>
    %c4_i32_63 = arith.constant 4 : i32
    %145 = tpu.dynamic_rotate %135 by %c4_i32_63 dim 0 : vector<32x128xf32>, i32 -> vector<32x128xf32>
    %c4_i32_64 = arith.constant 4 : i32
    %146 = vector.broadcast %c4_i32_64 : i32 to vector<32x1xi32>
    %147 = arith.cmpi sge, %1, %146 : vector<32x1xi32>
    %cst_65 = arith.constant 0.000000e+00 : f32
    %148 = vector.shape_cast %147 : vector<32x1xi1> to vector<32x1xi1>
    %149 = vector.broadcast %148 : vector<32x1xi1> to vector<32x128xi1>
    %150 = vector.broadcast %cst_65 : f32 to vector<32x128xf32>
    %151 = arith.select %149, %145, %150 : vector<32x128xi1>, vector<32x128xf32>
    %152 = arith.truncf %151 : vector<32x128xf32> to vector<32x128xbf16>
    %153 = arith.truncf %135 : vector<32x128xf32> to vector<32x128xbf16>
    %154 = tpu.concatenate %144, %152, %153 in 1 : vector<32x128xbf16>, vector<32x128xbf16>, vector<32x128xbf16> -> vector<32x384xbf16>
    %c0_66 = arith.constant 0 : index
    %c0_67 = arith.constant 0 : index
    %155 = vector.load %arg13[%c0_66, %c0_67] : memref<384x128xbf16, #tpu.memory_space<vmem>>, vector<384x128xbf16>
    %cst_68 = arith.constant dense<0.000000e+00> : vector<32x128xf32>
    %156 = tpu.matmul %154, %155, %cst_68 {dimension_numbers = #tpu.dot_dimension_numbers<[1], [0], [0], [1], [0, 0, 1, 1], [], []>} : vector<32x384xbf16>, vector<384x128xbf16>, vector<32x128xf32> -> vector<32x128xf32>
    %c0_69 = arith.constant 0 : index
    %c0_70 = arith.constant 0 : index
    %157 = vector.load %arg14[%c0_69, %c0_70] : memref<1x128xf32, #tpu.memory_space<vmem>>, vector<1x128xf32>
    %158 = vector.broadcast %157 : vector<1x128xf32> to vector<32x128xf32>
    %159 = arith.addf %156, %158 : vector<32x128xf32>
    %cst_71 = arith.constant 0.000000e+00 : f32
    %160 = vector.broadcast %cst_71 : f32 to vector<32x128xf32>
    %161 = arith.maximumf %159, %160 : vector<32x128xf32>
    %162 = arith.addf %161, %136 : vector<32x128xf32>
    %cst_72 = arith.constant 0.000000e+00 : f32
    %163 = vector.broadcast %cst_72 : f32 to vector<32x128xf32>
    %164 = arith.maximumf %162, %163 : vector<32x128xf32>
    %cst_73 = arith.constant 0.000000e+00 : f32
    %165 = vector.broadcast %cst_73 : f32 to vector<96x128xf32>
    %166 = tpu.concatenate %164, %165 in 0 : vector<32x128xf32>, vector<96x128xf32> -> vector<128x128xf32>
    %167 = tpu.transpose %166, [1, 0] : vector<128x128xf32> -> vector<128x128xf32>
    %168 = vector.extract_strided_slice %167 {offsets = [0, 0], sizes = [128, 16], strides = [1, 1]} : vector<128x128xf32> to vector<128x16xf32>
    %c0_74 = arith.constant 0 : index
    %c0_75 = arith.constant 0 : index
    %c0_76 = arith.constant 0 : index
    %169 = vector.load %arg15[%c0_74, %c0_75, %c0_76] : memref<2x128x16xf32, #tpu.memory_space<vmem>>, vector<1x128x16xf32>
    %170 = vector.shape_cast %169 : vector<1x128x16xf32> to vector<128x16xf32>
    %171 = vector.shape_cast %168 : vector<128x16xf32> to vector<1x128x16xf32>
    tpu.vector_store %arg15[%c0_74, %c0_75, %c0_76], %171 {strides = array<i32>} : memref<2x128x16xf32, #tpu.memory_space<vmem>>, vector<1x128x16xf32>,
    %172 = vector.extract_strided_slice %167 {offsets = [0, 16], sizes = [128, 16], strides = [1, 1]} : vector<128x128xf32> to vector<128x16xf32>
    %c1 = arith.constant 1 : index
    %c0_77 = arith.constant 0 : index
    %c0_78 = arith.constant 0 : index
    %173 = vector.load %arg15[%c1, %c0_77, %c0_78] : memref<2x128x16xf32, #tpu.memory_space<vmem>>, vector<1x128x16xf32>
    %174 = vector.shape_cast %173 : vector<1x128x16xf32> to vector<128x16xf32>
    %175 = vector.shape_cast %172 : vector<128x16xf32> to vector<1x128x16xf32>
    tpu.vector_store %arg15[%c1, %c0_77, %c0_78], %175 {strides = array<i32>} : memref<2x128x16xf32, #tpu.memory_space<vmem>>, vector<1x128x16xf32>,
    return
  }
  func.func @transform_0(%arg0: i32) -> (i32, i32) {
    %c0_i32 = arith.constant 0 : i32
    %c0_i32_0 = arith.constant 0 : i32
    return %arg0, %c0_i32 : i32, i32
  }
  func.func @transform_1(%arg0: i32) -> (i32, i32) {
    %c0_i32 = arith.constant 0 : i32
    %c0_i32_0 = arith.constant 0 : i32
    %c0_i32_1 = arith.constant 0 : i32
    return %c0_i32, %c0_i32_0 : i32, i32
  }
  func.func @transform_2(%arg0: i32) -> (i32, i32) {
    %c0_i32 = arith.constant 0 : i32
    %c0_i32_0 = arith.constant 0 : i32
    %c0_i32_1 = arith.constant 0 : i32
    return %c0_i32, %c0_i32_0 : i32, i32
  }
  func.func @transform_3(%arg0: i32) -> (i32, i32) {
    %c0_i32 = arith.constant 0 : i32
    %c0_i32_0 = arith.constant 0 : i32
    %c0_i32_1 = arith.constant 0 : i32
    return %c0_i32, %c0_i32_0 : i32, i32
  }
  func.func @transform_4(%arg0: i32) -> (i32, i32) {
    %c0_i32 = arith.constant 0 : i32
    %c0_i32_0 = arith.constant 0 : i32
    %c0_i32_1 = arith.constant 0 : i32
    return %c0_i32, %c0_i32_0 : i32, i32
  }
  func.func @transform_5(%arg0: i32) -> (i32, i32) {
    %c0_i32 = arith.constant 0 : i32
    %c0_i32_0 = arith.constant 0 : i32
    %c0_i32_1 = arith.constant 0 : i32
    return %c0_i32, %c0_i32_0 : i32, i32
  }
  func.func @transform_6(%arg0: i32) -> (i32, i32) {
    %c0_i32 = arith.constant 0 : i32
    %c0_i32_0 = arith.constant 0 : i32
    %c0_i32_1 = arith.constant 0 : i32
    return %c0_i32, %c0_i32_0 : i32, i32
  }
  func.func @transform_7(%arg0: i32) -> (i32, i32) {
    %c0_i32 = arith.constant 0 : i32
    %c0_i32_0 = arith.constant 0 : i32
    %c0_i32_1 = arith.constant 0 : i32
    return %c0_i32, %c0_i32_0 : i32, i32
  }
  func.func @transform_8(%arg0: i32) -> (i32, i32) {
    %c0_i32 = arith.constant 0 : i32
    %c0_i32_0 = arith.constant 0 : i32
    %c0_i32_1 = arith.constant 0 : i32
    return %c0_i32, %c0_i32_0 : i32, i32
  }
  func.func @transform_9(%arg0: i32) -> (i32, i32) {
    %c0_i32 = arith.constant 0 : i32
    %c0_i32_0 = arith.constant 0 : i32
    %c0_i32_1 = arith.constant 0 : i32
    return %c0_i32, %c0_i32_0 : i32, i32
  }
  func.func @transform_10(%arg0: i32) -> (i32, i32) {
    %c0_i32 = arith.constant 0 : i32
    %c0_i32_0 = arith.constant 0 : i32
    %c0_i32_1 = arith.constant 0 : i32
    return %c0_i32, %c0_i32_0 : i32, i32
  }
  func.func @transform_11(%arg0: i32) -> (i32, i32) {
    %c0_i32 = arith.constant 0 : i32
    %c0_i32_0 = arith.constant 0 : i32
    %c0_i32_1 = arith.constant 0 : i32
    return %c0_i32, %c0_i32_0 : i32, i32
  }
  func.func @transform_12(%arg0: i32) -> (i32, i32) {
    %c0_i32 = arith.constant 0 : i32
    %c0_i32_0 = arith.constant 0 : i32
    %c0_i32_1 = arith.constant 0 : i32
    return %c0_i32, %c0_i32_0 : i32, i32
  }
  func.func @transform_13(%arg0: i32) -> (i32, i32) {
    %c0_i32 = arith.constant 0 : i32
    %c0_i32_0 = arith.constant 0 : i32
    %c0_i32_1 = arith.constant 0 : i32
    return %c0_i32, %c0_i32_0 : i32, i32
  }
  func.func @transform_14(%arg0: i32) -> (i32, i32, i32) {
    %c0_i32 = arith.constant 0 : i32
    %c0_i32_0 = arith.constant 0 : i32
    %c0_i32_1 = arith.constant 0 : i32
    return %arg0, %c0_i32, %c0_i32_0 : i32, i32, i32
  }
}

</mosaic_0001>

<bundles_post_ra>
// kernel: tile.0
= control target key start
LH: loop header
LB: loop body
LE: loop exit
PB: predicated region body
PF: predicated region fallthrough
CT: control target
= control target key end

     0   :  { %s130_s8 = smov 127   ;;  %s131_s9 = smov 123   ;;  %vm7_vm0 = vcmask 7168   ;;  %s221_s0 = inlined_call_operand.vmem [shape: s32[2,16], index: 0, kind: input, shape index: {}]   ;;  %s222_s1 = inlined_call_operand.vmem [shape: s32[32,1], index: 1, kind: output, shape index: {}]  }
   0x1   :  { %v4_v0 = vld [vmem:[%s221_s0] sm:$0x3]  ;;  %s129_s0 = smov 125   ;;  %s132_s10 = smov 124  }
   0x2   :  { %5 = vst [vmem:[#allocation0] sm:$0x3] %v4_v0  ;;  %s133_s11 = smov 126   ;;  %s134_s12 = smov 122  }
   0x3   :  { %s135_s13 = smov 120   ;;  %s136_s14 = smov 121  }
   0x4   :  { %s137_s15 = smov 119   ;;  %s138_s16 = smov 117  }
   0x5   :  { %s139_s17 = smov 118   ;;  %s140_s18 = smov 116  }
   0x6   :  { %s141_s19 = smov 114   ;;  %s142_s20 = smov 115  }
   0x7   :  { %s143_s21 = smov 113  }
   0x9   :  { %v21_v1 = vld [vmem:[#allocation0] sm:$0x3]  }
   0xa   :  { %v9_v2 = vld [vmem:[#allocation0] sm:$0x3]   ;;  %22 = vrot.lane.b32.xlu1 %v21_v1, %s129_s0 }
   0xb   :  { %10 = vrot.lane.b32.xlu0 %v9_v2, %s130_s8  ;;  %v33_v3 = vld [vmem:[#allocation0] sm:$0x3]  }
   0xc   :  { %34 = vrot.lane.b32.xlu2 %v33_v3, %s131_s9  ;;  %v27_v4 = vld [vmem:[#allocation0] sm:$0x3]  }
   0xd   :  { %v15_v5 = vld [vmem:[#allocation0] sm:$0x3]  }
   0xe   :  { %v39_v6 = vld [vmem:[#allocation0] sm:$0x3]  }
   0xf   :  { %v51_v7 = vld [vmem:[#allocation0] sm:$0x3]  }
  0x10   :  { %v45_v8 = vld [vmem:[#allocation0] sm:$0x3]  }
  0x11   :  { %v57_v9 = vld [vmem:[#allocation0] sm:$0x3]  }
  0x12   :  { %28 = vrot.lane.b32.xlu1 %v27_v4, %s132_s10  ;;  %v69_v10 = vld [vmem:[#allocation0] sm:$0x3]  }
  0x13   :  { %16 = vrot.lane.b32.xlu0 %v15_v5, %s133_s11  ;;  %v63_v11 = vld [vmem:[#allocation0] sm:$0x3]  }
  0x14   :  { %40 = vrot.lane.b32.xlu2 %v39_v6, %s134_s12  ;;  %v75_v12 = vld [vmem:[#allocation0] sm:$0x3]  }
  0x15   :  { %v87_v13 = vld [vmem:[#allocation0] sm:$0x3]  }
  0x16   :  { %v81_v14 = vld [vmem:[#allocation0] sm:$0x3]  }
  0x17   :  { %v93_v15 = vld [vmem:[#allocation0] sm:$0x3]  }
  0x18   :  { %v6_v21 = vld [vmem:[#allocation0] sm:$0x3]  }
  0x19   :  { %8 = vst.msk [vmem:[%s222_s1] ss:$16 sm:$0x3] %vm7_vm0, %v6_v21  }
  0x1a   :  { %52 = vrot.lane.b32.xlu1 %v51_v7, %s135_s13 }
  0x1b   :  { %46 = vrot.lane.b32.xlu0 %v45_v8, %s136_s14 }
  0x1c   :  { %58 = vrot.lane.b32.xlu2 %v57_v9, %s137_s15 }
  0x22   :  { %70 = vrot.lane.b32.xlu1 %v69_v10, %s138_s16 }
  0x23   :  { %64 = vrot.lane.b32.xlu0 %v63_v11, %s139_s17 }
  0x24   :  { %76 = vrot.lane.b32.xlu2 %v75_v12, %s140_s18 }
  0x2a   :  { %88 = vrot.lane.b32.xlu1 %v87_v13, %s141_s19 }
  0x2b   :  { %82 = vrot.lane.b32.xlu0 %v81_v14, %s142_s20 }
  0x2c   :  { %94 = vrot.lane.b32.xlu2 %v93_v15, %s143_s21 }
  0x66   :  { %v35_v16 = vpop.permute.xlu2 %34  }
  0x67   :  { %103 = vst.msk [vmem:[%s222_s1 + $0x5] ss:$16 sm:$0x3] %vm7_vm0, %v35_v16  }
  0x6e   :  { %v41_v17 = vpop.permute.xlu2 %40  }
  0x6f   :  { %104 = vst.msk [vmem:[%s222_s1 + $0x6] ss:$16 sm:$0x3] %vm7_vm0, %v41_v17  }
  0x76   :  { %v59_v18 = vpop.permute.xlu2 %58  }
  0x77   :  { %107 = vst.msk [vmem:[%s222_s1 + $0x9] ss:$16 sm:$0x3] %vm7_vm0, %v59_v18  }
  0x7c   :  { %v23_v19 = vpop.permute.xlu1 %22  }
  0x7d   :  { %v11_v20 = vpop.permute.xlu0 %10   ;;  %101 = vst.msk [vmem:[%s222_s1 + $0x3] ss:$16 sm:$0x3] %vm7_vm0, %v23_v19  }
  0x7e   :  { %99 = vst.msk [vmem:[%s222_s1 + $0x1] ss:$16 sm:$0x3] %vm7_vm0, %v11_v20   ;;  %v77_v22 = vpop.permute.xlu2 %76  }
  0x7f   :  { %110 = vst.msk [vmem:[%s222_s1 + $0xc] ss:$16 sm:$0x3] %vm7_vm0, %v77_v22  }
  0x84   :  { %v29_v23 = vpop.permute.xlu1 %28  }
  0x85   :  { %v17_v24 = vpop.permute.xlu0 %16   ;;  %102 = vst.msk [vmem:[%s222_s1 + $0x4] ss:$16 sm:$0x3] %vm7_vm0, %v29_v23  }
  0x86   :  { %100 = vst.msk [vmem:[%s222_s1 + $0x2] ss:$16 sm:$0x3] %vm7_vm0, %v17_v24   ;;  %v95_v25 = vpop.permute.xlu2 %94  }
  0x87   :  { %113 = vst.msk [vmem:[%s222_s1 + $0xf] ss:$16 sm:$0x3] %vm7_vm0, %v95_v25  }
  0x8c   :  { %v53_v26 = vpop.permute.xlu1 %52  }
  0x8d   :  { %v47_v27 = vpop.permute.xlu0 %46   ;;  %106 = vst.msk [vmem:[%s222_s1 + $0x8] ss:$16 sm:$0x3] %vm7_vm0, %v53_v26  }
  0x8e   :  { %105 = vst.msk [vmem:[%s222_s1 + $0x7] ss:$16 sm:$0x3] %vm7_vm0, %v47_v27  }
  0x94   :  { %v71_v28 = vpop.permute.xlu1 %70  }
  0x95   :  { %v65_v29 = vpop.permute.xlu0 %64   ;;  %109 = vst.msk [vmem:[%s222_s1 + $0xb] ss:$16 sm:$0x3] %vm7_vm0, %v71_v28  }
  0x96   :  { %108 = vst.msk [vmem:[%s222_s1 + $0xa] ss:$16 sm:$0x3] %vm7_vm0, %v65_v29  }
  0x9c   :  { %v89_v30 = vpop.permute.xlu1 %88  }
  0x9d   :  { %v83_v31 = vpop.permute.xlu0 %82   ;;  %112 = vst.msk [vmem:[%s222_s1 + $0xe] ss:$16 sm:$0x3] %vm7_vm0, %v89_v30  }
  0x9e   :  { %111 = vst.msk [vmem:[%s222_s1 + $0xd] ss:$16 sm:$0x3] %vm7_vm0, %v83_v31  }

// kernel: temporal_conv_net.1
= control target key start
LH: loop header
LB: loop body
LE: loop exit
PB: predicated region body
PF: predicated region fallthrough
CT: control target
= control target key end

     0   :  { %v1983_v0 = vmov 0   ;;  %s1984_s24 = smov 24   ;;  %v60_v19 = vlaneseq  ;;  %vm223_vm13 = vcmask 1041408   ;;  %s1986_s20 = smov 64   ;;  %s2924_s1 = inlined_call_operand.vmem [shape: s32[32,1], index: 1, kind: input, shape index: {}]   ;;  %s2925_s0 = inlined_call_operand.vmem [shape: f32[32,12], index: 0, kind: input, shape index: {}]   ;;  %s2926_s3 = inlined_call_operand.vmem [shape: f32[1,12], index: 3, kind: input, shape index: {}]   ;;  %s2927_s2 = inlined_call_operand.vmem [shape: bf16[36,12], index: 2, kind: input, shape index: {}]   ;;  %s2928_s5 = inlined_call_operand.vmem [shape: f32[1,12], index: 5, kind: input, shape index: {}]   ;;  %s2929_s4 = inlined_call_operand.vmem [shape: bf16[36,12], index: 4, kind: input, shape index: {}]   ;;  %s2930_s7 = inlined_call_operand.vmem [shape: f32[1,128], index: 7, kind: input, shape index: {}]   ;;  %s2931_s6 = inlined_call_operand.vmem [shape: bf16[36,128], index: 6, kind: input, shape index: {}]   ;;  %s2932_s8 = inlined_call_operand.vmem [shape: bf16[192,64], index: 8, kind: input, shape index: {}]   ;;  %s2933_s9 = inlined_call_operand.vmem [shape: f32[1,64], index: 9, kind: input, shape index: {}]   ;;  %s2934_s10 = inlined_call_operand.vmem [shape: bf16[192,256], index: 10, kind: input, shape index: {}]   ;;  %s2935_s12 = inlined_call_operand.vmem [shape: bf16[384,128], index: 12, kind: input, shape index: {}]   ;;  %s2936_s11 = inlined_call_operand.vmem [shape: f32[1,256], index: 11, kind: input, shape index: {}]   ;;  %s2937_s13 = inlined_call_operand.vmem [shape: f32[1,128], index: 13, kind: input, shape index: {}]   ;;  %s2938_s14 = inlined_call_operand.vmem [shape: f32[2,128,16], index: 14, kind: output, shape index: {}]  }
   0x1   :  { %1975 = vset.pattern.permute.xlu0 %v1983_v0  ;;  %v2067_v1 = vld [vmem:[%s2924_s1] sm:$0xff]  ;;  %1976 = vset.pattern.permute.xlu1 %v1983_v0  ;;  %v2073_v2 = vld [vmem:[%s2924_s1 + $0x10] sm:$0xff]  ;;  %v2083_v5 = vld [vmem:[%s2924_s1 + $0x8] sm:$0xff] }
   0x2   :  { %vm108_vm0 = vcmp.ge.s32.totalorder %v2067_v1, 1  ;;  %vm110_vm1 = vcmp.ge.s32.totalorder %v2073_v2, 1  ;;  %1977 = vset.pattern.permute.xlu2 %v1983_v0  ;;  %v2088_v6 = vld [vmem:[%s2924_s1 + $0x18] sm:$0xff]  ;;  %vm109_vm2 = vcmp.ge.s32.totalorder %v2083_v5, 1  ;;  %vm67_vm4 = vcmp.ge.s32.totalorder %v2067_v1, 2  ;;  %v2099_v10 = vld [vmem:[%s2925_s0] sm:$0xff] }
   0x3   :  { %v112_v3 = vsel %vm108_vm0, 1, %v1983_v0  ;;  %v114_v4 = vsel %vm110_vm1, 1, %v1983_v0  ;;  %vm111_vm3 = vcmp.ge.s32.totalorder %v2088_v6, 1  ;;  %v113_v7 = vsel %vm109_vm2, 1, %v1983_v0  ;;  %v2104_v11 = vld [vmem:[%s2925_s0 + $0x8] sm:$0xff]  ;;  %v2118_v20 = vld [vmem:[%s2925_s0 + $0x18] sm:$0xff] }
   0x4   :  { %117 = vperm.xlu0 %1975, %v112_v3   ;;  %123 = vperm.xlu1 %1976, %v114_v4   ;;  %v115_v8 = vsel %vm111_vm3, 1, %v1983_v0  ;;  %v71_v9 = vsel %vm67_vm4, 1, %v1983_v0  ;;  %v140_v12 = vpack.c.bf16 %v2099_v10, %v2099_v10  ;;  %v141_v13 = vpack.c.bf16 %v2104_v11, %v2104_v11  ;;  %v2123_v21 = vld [vmem:[%s2925_s0 + $0x10] sm:$0xff]  ;;  %s1985_s0 = smov 12   ;;  %v1896_v59 = vld [vmem:[%s2927_s2 + $0x8] sm:$0xff]  ;;  %v1895_v60 = vld [vmem:[%s2927_s2] sm:$0xff] }
   0x5   :  { %76 = vperm.xlu2 %1977, %v71_v9   ;;  %vm68_vm5 = vcmp.ge.s32.totalorder %v2083_v5, 2  ;;  %vm69_vm6 = vcmp.ge.s32.totalorder %v2073_v2, 2  ;;  %v142_v22 = vpack.c.bf16 %v2123_v21, %v2123_v21  ;;  %v143_v23 = vpack.c.bf16 %v2118_v20, %v2118_v20  ;;  %v198_v55 = vld [vmem:[%s2927_s2 + $0x10] sm:$0x3] }
   0x6   :  { %v172_v14 = vunpack.c.l.b16 %v140_v12  ;;  %v173_v15 = vunpack.c.l.b16 %v141_v13  ;;  %v72_v16 = vsel %vm68_vm5, 1, %v1983_v0  ;;  %v73_v18 = vsel %vm69_vm6, 1, %v1983_v0 }
   0x7   :  { %v174_v24 = vunpack.c.l.b16 %v142_v22  ;;  %v175_v25 = vunpack.c.l.b16 %v143_v23  ;;  %v2129_v26 = vshrl.u32 %v60_v19, 7  ;;  %v101_v27 = vrot.slane %v2123_v21, 7 }
   0x8   :  { %v176_v17 = vpack.c.b16 %v173_v15, %v172_v14  ;;  %v99_v29 = vrot.slane %v2099_v10, 7  ;;  %v102_v30 = vrot.slane %v2118_v20, 7  ;;  %v100_v31 = vrot.slane %v2104_v11, 7 }
   0x9   :  { %v177_v28 = vpack.c.b16 %v175_v25, %v174_v24  ;;  %vm103_vm7 = vcmp.lt.s32.totalorder %v2129_v26, 1  ;;  %vm70_vm12 = vcmp.ge.s32.totalorder %v2088_v6, 2  ;;  %v212_v56 = vunpack.c.l.b16 %v198_v55 }
   0xa   :  { %v105_v34 = vsel %vm103_vm7, %v100_v31, %v101_v27  ;;  %v107_v35 = vsel %vm103_vm7, %v102_v30, %v99_v29  ;;  %v106_v39 = vsel %vm103_vm7, %v99_v29, %v100_v31  ;;  %v104_v40 = vsel %vm103_vm7, %v101_v27, %v102_v30 }
   0xb   :  { %v74_v54 = vsel %vm70_vm12, 1, %v1983_v0  ;;  %v215_v57 = vpack.c.b16 %v212_v56, %v212_v56  ;;  %v56_v62 = vrot.slane %v2099_v10, 6  ;;  %v59_v63 = vrot.slane %v2118_v20, 6 }
   0xc   :  { %120 = vperm.xlu0 %1975, %v113_v7   ;;  %126 = vperm.xlu1 %1976, %v115_v8   ;;  %v57_v3 = vrot.slane %v2104_v11, 6  ;;  %vm62_vm14 = vcmp.lt.s32.totalorder %v2129_v26, 2  ;;  %vm182_vm1 = vcmask 97280   ;;  %vm189_vm2 = vcmask 195584  }
   0xd   :  { %79 = vperm.xlu2 %1977, %v72_v16   ;;  %v225_v58 = vsel %vm223_vm13, %v215_v57, 0  ;;  %v66_v7 = vsel %vm62_vm14, %v59_v63, %v56_v62  ;;  %vm218_vm3 = vcmask 293888   ;;  %vm405_vm6 = vcmp.ge.s32.totalorder %v2067_v1, 4 }
   0xe   :  { %232 = vmatpush.bf16.msra.mxu0 %v225_v58  ;;  %v65_v8 = vsel %vm62_vm14, %v56_v62, %v57_v3  ;;  %vm408_vm12 = vcmp.ge.s32.totalorder %v2088_v6, 4 }
  0x12   :  { %233 = vmatpush.bf16.msra.mxu0 %v1896_v59 }
  0x14   :  { %178 = vrot.lane.b32.xlu1 %v176_v17, %s1984_s24  ;;  %v58_v17 = vrot.slane %v2123_v21, 6 }
  0x15   :  { %82 = vperm.xlu2 %1977, %v73_v18  }
  0x16   :  { %234 = vmatpush.bf16.msra.mxu0 %v1895_v60  ;;  %v64_v27 = vsel %vm62_vm14, %v57_v3, %v58_v17  ;;  %v63_v29 = vsel %vm62_vm14, %v58_v17, %v59_v63 }
  0x1d   :  { %180 = vrot.lane.b32.xlu2 %v177_v28, %s1984_s24 }
  0x5f   :  { %v2179_v61 = vpop.permute.xlu2 %76 }
  0x60   :  { %vm87_vm15 = vcmp.eq.s32.totalorder %v2179_v61, 1 }
  0x61   :  { %v91_v9 = vsel %vm87_vm15, %v66_v7, 0.0 }
  0x62   :  { %v95_v13 = vpack.c.bf16 %v91_v9, %v91_v9 }
  0x64   :  { %v148_v15 = vunpack.c.l.b16 %v95_v13 }
  0x67   :  { %v2185_v4 = vpop.permute.xlu2 %79 }
  0x68   :  { %vm88_vm0 = vcmp.eq.s32.totalorder %v2185_v4, 1 }
  0x69   :  { %v92_v12 = vsel %vm88_vm0, %v65_v8, 0.0 }
  0x6a   :  { %v96_v14 = vpack.c.bf16 %v92_v12, %v92_v12 }
  0x6c   :  { %v149_v16 = vunpack.c.l.b16 %v96_v14  ;;  %v409_v14 = vsel %vm405_vm6, 1, %v1983_v0 }
  0x6e   :  { %v152_v19 = vpack.c.b16 %v149_v16, %v148_v15 }
  0x6f   :  { %v2198_v22 = vpop.permute.xlu2 %82 }
  0x70   :  { %vm89_vm4 = vcmp.eq.s32.totalorder %v2198_v22, 1 }
  0x71   :  { %v93_v28 = vsel %vm89_vm4, %v64_v27, 0.0 }
  0x72   :  { %v97_v31 = vpack.c.bf16 %v93_v28, %v93_v28 }
  0x76   :  { %v2136_v32 = vpop.permute.xlu0 %117  ;;  %v2138_v33 = vpop.permute.xlu1 %123 }
  0x77   :  { %vm130_vm8 = vcmp.eq.s32.totalorder %v2138_v33, 1  ;;  %vm128_vm9 = vcmp.eq.s32.totalorder %v2136_v32, 1 }
  0x78   :  { %v134_v36 = vsel %vm130_vm8, %v105_v34, 0.0  ;;  %v132_v37 = vsel %vm128_vm9, %v107_v35, 0.0 }
  0x79   :  { %v138_v38 = vpack.c.bf16 %v134_v36, %v134_v36  ;;  %v136_v43 = vpack.c.bf16 %v132_v37, %v132_v37  ;;  %v150_v36 = vunpack.c.l.b16 %v97_v31 }
  0x7b   :  { %v160_v46 = vunpack.c.l.b16 %v138_v38  ;;  %v158_v49 = vunpack.c.l.b16 %v136_v43 }
  0x7e   :  { %v2155_v41 = vpop.permute.xlu0 %120  ;;  %v2157_v42 = vpop.permute.xlu1 %126 }
  0x7f   :  { %vm129_vm10 = vcmp.eq.s32.totalorder %v2155_v41, 1  ;;  %vm131_vm11 = vcmp.eq.s32.totalorder %v2157_v42, 1 }
  0x80   :  { %v133_v44 = vsel %vm129_vm10, %v106_v39, 0.0  ;;  %v135_v45 = vsel %vm131_vm11, %v104_v40, 0.0  ;;  %v181_v39 = vpop.permute.xlu2 %180 }
  0x81   :  { %v137_v47 = vpack.c.bf16 %v133_v44, %v133_v44  ;;  %v139_v48 = vpack.c.bf16 %v135_v45, %v135_v45  ;;  %v1978_v45 = vld [vmem:[%s2926_s3] ss:$0 sm:$0xff] }
  0x83   :  { %v159_v50 = vunpack.c.l.b16 %v137_v47  ;;  %v161_v51 = vunpack.c.l.b16 %v139_v48 }
  0x85   :  { %v162_v52 = vpack.c.b16 %v159_v50, %v158_v49  ;;  %v163_v53 = vpack.c.b16 %v161_v51, %v160_v46 }
  0x86   :  { %v179_v18 = vpop.permute.xlu1 %178 }
  0x87   :  { %164 = vrot.lane.b32.xlu0 %v162_v52, %s1985_s0  ;;  %166 = vrot.lane.b32.xlu1 %v163_v53, %s1985_s0 }
  0x8f   :  { %85 = vperm.xlu0 %1975, %v74_v54  }
  0xf9   :  { %v165_v23 = vpop.permute.xlu0 %164  ;;  %v167_v40 = vpop.permute.xlu1 %166 }
  0xfa   :  { %v185_v24 = vsel %vm182_vm1, %v152_v19, %v165_v23 }
  0xfb   :  { %v191_v25 = vsel %vm189_vm2, %v185_v24, %v179_v18 }
  0xfc   :  { %1611 = vmatmul.msk.bf16.vlgmr.msra.gmra.mxu0 %vm218_vm3, %v191_v25 }
 0x101   :  { %v2210_v30 = vpop.permute.xlu0 %85 }
 0x102   :  { %vm90_vm5 = vcmp.eq.s32.totalorder %v2210_v30, 1 }
 0x103   :  { %v94_v34 = vsel %vm90_vm5, %v63_v29, 0.0 }
 0x104   :  { %v98_v35 = vpack.c.bf16 %v94_v34, %v94_v34 }
 0x106   :  { %v151_v37 = vunpack.c.l.b16 %v98_v35 }
 0x108   :  { %v153_v38 = vpack.c.b16 %v151_v37, %v150_v36 }
 0x10a   :  { %v188_v43 = vsel %vm182_vm1, %v153_v38, %v167_v40 }
 0x10b   :  { %v193_v44 = vsel %vm189_vm2, %v188_v43, %v181_v39 }
 0x10c   :  { %1612 = vmatmul.msk.bf16.gmra.mxu0 %vm218_vm3, %v193_v44 }
 0x179   :  { %v236_v46 = vpop.f32.mrf.mxu0 }
 0x17a   :  { %v237_v47 = vadd.f32 %v1978_v45, %v236_v46 }
 0x17c   :  { %v246_v48 = vmax.f32 %v237_v47, 0.0 }
 0x17e   :  { %v282_v51 = vpack.c.bf16 %v246_v48, %v246_v48  ;;  %v250_v53 = vrot.slane %v246_v48, 6  ;;  %v266_v9 = vrot.slane %v246_v48, 7 }
 0x180   :  { %v314_v56 = vunpack.c.l.b16 %v282_v51 }
 0x181   :  { %v238_v49 = vpop.f32.mrf.mxu0 }
 0x182   :  { %v239_v50 = vadd.f32 %v1978_v45, %v238_v49 }
 0x184   :  { %v247_v52 = vmax.f32 %v239_v50, 0.0 }
 0x186   :  { %v251_v54 = vrot.slane %v247_v52, 6  ;;  %v283_v55 = vpack.c.bf16 %v247_v52, %v247_v52  ;;  %v267_v3 = vrot.slane %v247_v52, 7 }
 0x188   :  { %v315_v57 = vunpack.c.l.b16 %v283_v55  ;;  %v256_v58 = vsel %vm62_vm14, %v250_v53, %v251_v54  ;;  %v272_v16 = vsel %vm103_vm7, %v266_v9, %v267_v3 }
 0x189   :  { %v241_v59 = vpop.f32.mrf.mxu0  ;;  %v275_v23 = vsel %vm129_vm10, %v272_v16, 0.0  ;;  %v259_v25 = vsel %vm88_vm0, %v256_v58, 0.0 }
 0x18a   :  { %v242_v60 = vadd.f32 %v1978_v45, %v241_v59  ;;  %v318_v62 = vpack.c.b16 %v315_v57, %v314_v56  ;;  %v279_v31 = vpack.c.bf16 %v275_v23, %v275_v23  ;;  %v263_v36 = vpack.c.bf16 %v259_v25, %v259_v25 }
 0x18c   :  { %v248_v63 = vmax.f32 %v242_v60, 0.0  ;;  %320 = vrot.lane.b32.xlu1 %v318_v62, %s1984_s24  ;;  %v301_v47 = vunpack.c.l.b16 %v279_v31 }
 0x18e   :  { %v252_v7 = vrot.slane %v248_v63, 6  ;;  %v268_v8 = vrot.slane %v248_v63, 7 }
 0x190   :  { %v255_v12 = vsel %vm62_vm14, %v251_v54, %v252_v7  ;;  %v271_v15 = vsel %vm103_vm7, %v267_v3, %v268_v8  ;;  %v291_v54 = vunpack.c.l.b16 %v263_v36 }
 0x191   :  { %v243_v13 = vpop.f32.mrf.mxu0  ;;  %v276_v19 = vsel %vm130_vm8, %v271_v15, 0.0  ;;  %v260_v24 = vsel %vm89_vm4, %v255_v12, 0.0  ;;  %vm407_vm8 = vcmp.ge.s32.totalorder %v2073_v2, 4  ;;  %v1897_v15 = vld [vmem:[%s2929_s4] sm:$0xff] }
 0x192   :  { %v244_v17 = vadd.f32 %v1978_v45, %v243_v13  ;;  %v280_v29 = vpack.c.bf16 %v276_v19, %v276_v19  ;;  %v264_v34 = vpack.c.bf16 %v260_v24, %v260_v24 }
 0x194   :  { %v249_v18 = vmax.f32 %v244_v17, 0.0  ;;  %414 = vperm.xlu1 %1976, %v409_v14   ;;  %v302_v46 = vunpack.c.l.b16 %v280_v29  ;;  %v292_v48 = vunpack.c.l.b16 %v264_v34  ;;  %v1898_v14 = vld [vmem:[%s2929_s4 + $0x8] sm:$0xff] }
 0x196   :  { %v253_v27 = vrot.slane %v249_v18, 6  ;;  %v269_v28 = vrot.slane %v249_v18, 7  ;;  %v285_v52 = vpack.c.bf16 %v249_v18, %v249_v18 }
 0x198   :  { %v270_v35 = vsel %vm103_vm7, %v268_v8, %v269_v28  ;;  %v273_v33 = vsel %vm103_vm7, %v269_v28, %v266_v9  ;;  %v254_v41 = vsel %vm62_vm14, %v252_v7, %v253_v27  ;;  %v257_v40 = vsel %vm62_vm14, %v253_v27, %v250_v53  ;;  %v1979_v28 = vld [vmem:[%s2928_s5] ss:$0 sm:$0xff] }
 0x199   :  { %v277_v37 = vsel %vm131_vm11, %v270_v35, 0.0  ;;  %v274_v38 = vsel %vm128_vm9, %v273_v33, 0.0  ;;  %v261_v39 = vsel %vm90_vm5, %v254_v41, 0.0  ;;  %v258_v49 = vsel %vm87_vm15, %v257_v40, 0.0 }
 0x19a   :  { %v281_v43 = vpack.c.bf16 %v277_v37, %v277_v37  ;;  %v278_v44 = vpack.c.bf16 %v274_v38, %v274_v38  ;;  %v265_v45 = vpack.c.bf16 %v261_v39, %v261_v39  ;;  %v262_v32 = vpack.c.bf16 %v258_v49, %v258_v49 }
 0x19b   :  { %v284_v53 = vpack.c.bf16 %v248_v63, %v248_v63  ;;  %vm406_vm7 = vcmp.ge.s32.totalorder %v2083_v5, 4  ;;  %v317_v60 = vunpack.c.l.b16 %v285_v52  ;;  %v411_v8 = vsel %vm407_vm8, 1, %v1983_v0  ;;  %v338_v63 = vld [vmem:[%s2929_s4 + $0x10] sm:$0x3] }
 0x19c   :  { %v303_v42 = vunpack.c.l.b16 %v281_v43  ;;  %v300_v50 = vunpack.c.l.b16 %v278_v44  ;;  %v293_v51 = vunpack.c.l.b16 %v265_v45  ;;  %v290_v58 = vunpack.c.l.b16 %v262_v32 }
 0x19d   :  { %v316_v62 = vunpack.c.l.b16 %v284_v53  ;;  %v410_v3 = vsel %vm406_vm7, 1, %v1983_v0  ;;  %v352_v9 = vunpack.c.l.b16 %v338_v63  ;;  %vm400_vm9 = vcmp.lt.s32.totalorder %v2129_v26, 4 }
 0x19e   :  { %v305_v55 = vpack.c.b16 %v303_v42, %v302_v46  ;;  %v304_v56 = vpack.c.b16 %v301_v47, %v300_v50  ;;  %v295_v57 = vpack.c.b16 %v293_v51, %v292_v48  ;;  %v294_v59 = vpack.c.b16 %v291_v54, %v290_v58 }
 0x19f   :  { %v319_v7 = vpack.c.b16 %v317_v60, %v316_v62  ;;  %v355_v12 = vpack.c.b16 %v352_v9, %v352_v9  ;;  %vm1501_vm8 = vcmask 130048  }
 0x1a0   :  { %308 = vrot.lane.b32.xlu2 %v305_v55, %s1985_s0  ;;  %306 = vrot.lane.b32.xlu0 %v304_v56, %s1985_s0 }
 0x1a1   :  { %v363_v13 = vsel %vm223_vm13, %v355_v12, 0 }
 0x1a2   :  { %370 = vmatpush.bf16.msra.mxu1 %v363_v13 }
 0x1a6   :  { %371 = vmatpush.bf16.msra.mxu1 %v1898_v14 }
 0x1a8   :  { %417 = vperm.xlu2 %1977, %v410_v3   ;;  %322 = vrot.lane.b32.xlu0 %v319_v7, %s1984_s24 }
 0x1aa   :  { %372 = vmatpush.bf16.msra.mxu1 %v1897_v15 }
 0x1b0   :  { %420 = vperm.xlu2 %1977, %v411_v8  }
 0x1fa   :  { %v309_v23 = vpop.permute.xlu2 %308 }
 0x1fb   :  { %v329_v25 = vsel %vm182_vm1, %v295_v57, %v309_v23 }
 0x1fe   :  { %v321_v17 = vpop.permute.xlu1 %320 }
 0x202   :  { %v2289_v58 = vpop.permute.xlu2 %417 }
 0x203   :  { %vm426_vm10 = vcmp.eq.s32.totalorder %v2289_v58, 1 }
 0x206   :  { %v2301_v3 = vpop.permute.xlu1 %414 }
 0x207   :  { %vm425_vm11 = vcmp.eq.s32.totalorder %v2301_v3, 1 }
 0x212   :  { %v307_v16 = vpop.permute.xlu0 %306 }
 0x213   :  { %v326_v18 = vsel %vm182_vm1, %v294_v59, %v307_v16 }
 0x214   :  { %v331_v19 = vsel %vm189_vm2, %v326_v18, %v321_v17 }
 0x215   :  { %1621 = vmatmul.msk.bf16.vlgmr.msra.gmra.mxu1 %vm218_vm3, %v331_v19 }
 0x21a   :  { %v323_v24 = vpop.permute.xlu0 %322 }
 0x21b   :  { %v333_v27 = vsel %vm189_vm2, %v329_v25, %v323_v24 }
 0x225   :  { %1622 = vmatmul.msk.bf16.gmra.mxu1 %vm218_vm3, %v333_v27 }
 0x292   :  { %v374_v29 = vpop.f32.mrf.mxu1 }
 0x293   :  { %v375_v31 = vadd.f32 %v1979_v28, %v374_v29 }
 0x295   :  { %v384_v34 = vmax.f32 %v375_v31, 0.0 }
 0x297   :  { %v388_v35 = vadd.f32 %v384_v34, %v2099_v10 }
 0x299   :  { %v392_v36 = vmax.f32 %v388_v35, 0.0 }
 0x29a   :  { %v376_v33 = vpop.f32.mrf.mxu1 }
 0x29b   :  { %v377_v41 = vadd.f32 %v1979_v28, %v376_v33  ;;  %v453_v40 = vpack.c.bf16 %v392_v36, %v392_v36  ;;  %v396_v44 = vrot.slane %v392_v36, 4  ;;  %v437_v57 = vrot.slane %v392_v36, 6 }
 0x29d   :  { %v385_v37 = vmax.f32 %v377_v41, 0.0  ;;  %v485_v49 = vunpack.c.l.b16 %v453_v40 }
 0x29f   :  { %v389_v38 = vadd.f32 %v385_v37, %v2104_v11 }
 0x2a1   :  { %v393_v39 = vmax.f32 %v389_v38, 0.0 }
 0x2a2   :  { %v379_v43 = vpop.f32.mrf.mxu1 }
 0x2a3   :  { %v397_v45 = vrot.slane %v393_v39, 4  ;;  %v380_v46 = vadd.f32 %v1979_v28, %v379_v43  ;;  %v454_v47 = vpack.c.bf16 %v393_v39, %v393_v39  ;;  %v438_v11 = vrot.slane %v393_v39, 6 }
 0x2a5   :  { %v386_v48 = vmax.f32 %v380_v46, 0.0  ;;  %v486_v42 = vunpack.c.l.b16 %v454_v47  ;;  %v403_v10 = vsel %vm400_vm9, %v396_v44, %v397_v45  ;;  %v443_v60 = vsel %vm62_vm14, %v437_v57, %v438_v11 }
 0x2a6   :  { %v446_v9 = vsel %vm88_vm0, %v443_v60, 0.0  ;;  %v430_v12 = vsel %vm426_vm10, %v403_v10, 0.0  ;;  %v412_v47 = vsel %vm408_vm12, 1, %v1983_v0 }
 0x2a7   :  { %v390_v50 = vadd.f32 %v386_v48, %v2123_v21  ;;  %v489_v51 = vpack.c.b16 %v486_v42, %v485_v49  ;;  %v450_v17 = vpack.c.bf16 %v446_v9, %v446_v9  ;;  %v434_v18 = vpack.c.bf16 %v430_v12, %v430_v12  ;;  %v509_v48 = vld [vmem:[%s2931_s6 + $0x10] sm:$0x3] }
 0x2a8   :  { %v523_v49 = vunpack.c.l.b16 %v509_v48 }
 0x2a9   :  { %v394_v32 = vmax.f32 %v390_v50, 0.0  ;;  %491 = vrot.lane.b32.xlu1 %v489_v51, %s1984_s24  ;;  %v472_v36 = vunpack.c.l.b16 %v450_v17  ;;  %v462_v37 = vunpack.c.l.b16 %v434_v18  ;;  %v1900_v50 = vld [vmem:[%s2931_s6 + $0x8] sm:$0xff]  ;;  %v1899_v51 = vld [vmem:[%s2931_s6] sm:$0xff] }
 0x2aa   :  { %v381_v52 = vpop.f32.mrf.mxu1  ;;  %v526_v42 = vpack.c.b16 %v523_v49, %v523_v49 }
 0x2ab   :  { %v398_v54 = vrot.slane %v394_v32, 4  ;;  %v439_v55 = vrot.slane %v394_v32, 6  ;;  %v382_v56 = vadd.f32 %v1979_v28, %v381_v52  ;;  %v455_v7 = vpack.c.bf16 %v394_v32, %v394_v32 }
 0x2ac   :  { %v534_v10 = vsel %vm223_vm13, %v526_v42, 0 }
 0x2ad   :  { %v387_v53 = vmax.f32 %v382_v56, 0.0  ;;  %v2293_v59 = vsel %vm400_vm9, %v397_v45, %v398_v54  ;;  %v442_v21 = vsel %vm62_vm14, %v438_v11, %v439_v55  ;;  %v487_v15 = vunpack.c.l.b16 %v455_v7  ;;  %541 = vmatpush.bf16.msra.mxu2 %v534_v10 }
 0x2ae   :  { %v447_v63 = vsel %vm89_vm4, %v442_v21, 0.0 }
 0x2af   :  { %v391_v62 = vadd.f32 %v387_v53, %v2118_v20  ;;  %v451_v16 = vpack.c.bf16 %v447_v63, %v447_v63 }
 0x2b1   :  { %v395_v8 = vmax.f32 %v391_v62, 0.0  ;;  %v473_v38 = vunpack.c.l.b16 %v451_v16  ;;  %542 = vmatpush.bf16.msra.mxu2 %v1900_v50  ;;  %v1980_v16 = vld [vmem:[%s2930_s7] ss:$0 sm:$0xff] }
 0x2b3   :  { %v399_v13 = vrot.slane %v395_v8, 4  ;;  %v440_v14 = vrot.slane %v395_v8, 6  ;;  %v456_v20 = vpack.c.bf16 %v395_v8, %v395_v8 }
 0x2b5   :  { %v488_v19 = vunpack.c.l.b16 %v456_v20  ;;  %v441_v23 = vsel %vm62_vm14, %v439_v55, %v440_v14  ;;  %v444_v24 = vsel %vm62_vm14, %v440_v14, %v437_v57  ;;  %v404_v25 = vsel %vm400_vm9, %v399_v13, %v396_v44  ;;  %543 = vmatpush.bf16.msra.mxu2 %v1899_v51  ;;  %v1911_v14 = vld [vmem:[%s2932_s8 + $0x50] sm:$0xff]  ;;  %v1910_v20 = vld [vmem:[%s2932_s8 + $0x48] sm:$0xff] }
 0x2b6   :  { %v448_v27 = vsel %vm90_vm5, %v441_v23, 0.0  ;;  %v445_v28 = vsel %vm87_vm15, %v444_v24, 0.0  ;;  %v429_v29 = vsel %vm425_vm11, %v404_v25, 0.0  ;;  %v401_v31 = vsel %vm400_vm9, %v398_v54, %v399_v13  ;;  %v2340_v54 = vpop.permute.xlu2 %420 }
 0x2b7   :  { %v490_v34 = vpack.c.b16 %v488_v19, %v487_v15  ;;  %v452_v35 = vpack.c.bf16 %v448_v27, %v448_v27  ;;  %v449_v33 = vpack.c.bf16 %v445_v28, %v445_v28  ;;  %v433_v41 = vpack.c.bf16 %v429_v29, %v429_v29  ;;  %v1909_v15 = vld [vmem:[%s2932_s8 + $0x40] sm:$0xff] }
 0x2b8   :  { %vm427_vm13 = vcmp.eq.s32.totalorder %v2340_v54, 1  ;;  %v1982_v54 = vld [vmem:[%s2937_s13] ss:$0 sm:$0xff] }
 0x2b9   :  { %493 = vrot.lane.b32.xlu2 %v490_v34, %s1984_s24  ;;  %v474_v39 = vunpack.c.l.b16 %v452_v35  ;;  %v471_v40 = vunpack.c.l.b16 %v449_v33  ;;  %v461_v43 = vunpack.c.l.b16 %v433_v41  ;;  %v431_v56 = vsel %vm427_vm13, %v2293_v59, 0.0  ;;  %v1912_v59 = vld [vmem:[%s2932_s8 + $0x58] sm:$0xff] }
 0x2ba   :  { %v435_v53 = vpack.c.bf16 %v431_v56, %v431_v56  ;;  %767 = vmatpush.bf16.msrb.mxu0 %v1912_v59 }
 0x2bb   :  { %v476_v44 = vpack.c.b16 %v474_v39, %v473_v38  ;;  %v475_v45 = vpack.c.b16 %v472_v36, %v471_v40  ;;  %v465_v46 = vpack.c.b16 %v462_v37, %v461_v43 }
 0x2bc   :  { %v463_v62 = vunpack.c.l.b16 %v435_v53 }
 0x2bd   :  { %479 = vrot.lane.b32.xlu1 %v476_v44, %s1985_s0  ;;  %477 = vrot.lane.b32.xlu0 %v475_v45, %s1985_s0  ;;  %s1987_s0 = smov 112  }
 0x2be   :  { %768 = vmatpush.bf16.msrb.mxu0 %v1911_v14 }
 0x2c2   :  { %769 = vmatpush.bf16.msrb.mxu0 %v1910_v20 }
 0x2c5   :  { %423 = vperm.xlu0 %1975, %v412_v47  }
 0x2c6   :  { %770 = vmatpush.bf16.msrb.mxu0 %v1909_v15 }
 0x313   :  { %v494_v9 = vpop.permute.xlu2 %493 }
 0x31b   :  { %v492_v11 = vpop.permute.xlu1 %491 }
 0x32f   :  { %v478_v32 = vpop.permute.xlu0 %477  ;;  %v480_v63 = vpop.permute.xlu1 %479 }
 0x330   :  { %v497_v52 = vsel %vm182_vm1, %v465_v46, %v478_v32 }
 0x331   :  { %v502_v55 = vsel %vm189_vm2, %v497_v52, %v492_v11 }
 0x332   :  { %1631 = vmatmul.msk.bf16.vlgmr.msra.gmra.mxu2 %vm218_vm3, %v502_v55 }
 0x337   :  { %v2348_v57 = vpop.permute.xlu0 %423 }
 0x338   :  { %vm428_vm6 = vcmp.eq.s32.totalorder %v2348_v57, 1 }
 0x339   :  { %v432_v21 = vsel %vm428_vm6, %v401_v31, 0.0 }
 0x33a   :  { %v436_v60 = vpack.c.bf16 %v432_v21, %v432_v21 }
 0x33c   :  { %v464_v7 = vunpack.c.l.b16 %v436_v60 }
 0x33e   :  { %v466_v8 = vpack.c.b16 %v464_v7, %v463_v62 }
 0x340   :  { %v500_v12 = vsel %vm182_vm1, %v466_v8, %v480_v63  ;;  %vm629_vm1 = vcmask 523264  }
 0x341   :  { %v504_v13 = vsel %vm189_vm2, %v500_v12, %v494_v9  ;;  %vm812_vm2 = vcmp.ge.s32.totalorder %v2073_v2, 8  ;;  %v1906_v2 = vld [vmem:[%s2932_s8 + $0x28] sm:$0xff] }
 0x342   :  { %1632 = vmatmul.msk.bf16.gmra.mxu2 %vm218_vm3, %v504_v13 }
 0x3b5   :  { %v545_v17 = vpop.f32.mrf.mxu2 }
 0x3b6   :  { %v546_v18 = vadd.f32 %v1980_v16, %v545_v17 }
 0x3b8   :  { %790 = vrot.lane.b32.xlu2 %v546_v18, %s1986_s20  ;;  %v555_v19 = vmax.f32 %v546_v18, 0.0 }
 0x3ba   :  { %v591_v25 = vpack.c.bf16 %v555_v19, %v555_v19  ;;  %v559_v28 = vrot.slane %v555_v19, 4  ;;  %v575_v44 = vrot.slane %v555_v19, 6 }
 0x3bc   :  { %v623_v34 = vunpack.c.l.b16 %v591_v25 }
 0x3bd   :  { %v547_v23 = vpop.f32.mrf.mxu2 }
 0x3be   :  { %v2372_v24 = vadd.f32 %v1980_v16, %v547_v23 }
 0x3c0   :  { %v556_v27 = vmax.f32 %v2372_v24, 0.0 }
 0x3c2   :  { %v560_v29 = vrot.slane %v556_v27, 4  ;;  %v592_v31 = vpack.c.bf16 %v556_v27, %v556_v27  ;;  %v576_v39 = vrot.slane %v556_v27, 6 }
 0x3c4   :  { %v624_v35 = vunpack.c.l.b16 %v592_v31  ;;  %v565_v33 = vsel %vm400_vm9, %v559_v28, %v560_v29  ;;  %v581_v47 = vsel %vm62_vm14, %v575_v44, %v576_v39 }
 0x3c5   :  { %v550_v41 = vpop.f32.mrf.mxu2  ;;  %v584_v51 = vsel %vm88_vm0, %v581_v47, 0.0  ;;  %v568_v55 = vsel %vm426_vm10, %v565_v33, 0.0  ;;  %vm813_vm0 = vcmp.ge.s32.totalorder %v2088_v6, 8  ;;  %v1904_v6 = vld [vmem:[%s2932_s8 + $0x18] sm:$0xff]  ;;  %v1773_v47 = vld [vmem:[%s2934_s10 + $0xb0] sm:$0xf] }
 0x3c6   :  { %v551_v36 = vadd.f32 %v1980_v16, %v550_v41  ;;  %v627_v37 = vpack.c.b16 %v624_v35, %v623_v34  ;;  %v588_v21 = vpack.c.bf16 %v584_v51, %v584_v51  ;;  %v572_v9 = vpack.c.bf16 %v568_v55, %v568_v55  ;;  %v1765_v51 = vld [vmem:[%s2934_s10 + $0xa0] sm:$0xf]  ;;  %v1767_v55 = vld [vmem:[%s2934_s10 + $0xa8] sm:$0xf0] }
 0x3c8   :  { %v557_v38 = vmax.f32 %v551_v36, 0.0  ;;  %794 = vrot.lane.b32.xlu2 %v551_v36, %s1986_s20  ;;  %1681 = vmatmul.msk.bf16.vlgmr.msrb.gmra.mxu0 %vm629_vm1, %v627_v37  ;;  %v610_v20 = vunpack.c.l.b16 %v588_v21  ;;  %v600_v25 = vunpack.c.l.b16 %v572_v9  ;;  %v817_v37 = vsel %vm813_vm0, 1, %v1983_v0  ;;  %v1932_v21 = vld [vmem:[%s2934_s10 + $0x94] sm:$0xf0] }
 0x3ca   :  { %v561_v40 = vrot.slane %v557_v38, 4  ;;  %v577_v43 = vrot.slane %v557_v38, 6  ;;  %v593_v42 = vpack.c.bf16 %v557_v38, %v557_v38  ;;  %v816_v38 = vsel %vm812_vm2, 1, %v1983_v0 }
 0x3cc   :  { %v580_v46 = vsel %vm62_vm14, %v576_v39, %v577_v43  ;;  %v564_v48 = vsel %vm400_vm9, %v560_v29, %v561_v40  ;;  %v625_v56 = vunpack.c.l.b16 %v593_v42  ;;  %v1902_v39 = vld [vmem:[%s2932_s8 + $0x8] sm:$0xff] }
 0x3cd   :  { %v552_v45 = vpop.f32.mrf.mxu2  ;;  %v585_v50 = vsel %vm89_vm4, %v580_v46, 0.0  ;;  %v569_v4 = vsel %vm427_vm13, %v564_v48, 0.0  ;;  %v1936_v48 = vld [vmem:[%s2934_s10 + $0xb4] sm:$0xf0] }
 0x3ce   :  { %v553_v49 = vadd.f32 %v1980_v16, %v552_v45  ;;  %v589_v53 = vpack.c.bf16 %v585_v50, %v585_v50  ;;  %v573_v30 = vpack.c.bf16 %v569_v4, %v569_v4  ;;  %v1774_v42 = vor.u32 %v1936_v48, %v1773_v47 }
 0x3d0   :  { %v558_v10 = vmax.f32 %v553_v49, 0.0  ;;  %v611_v61 = vunpack.c.l.b16 %v589_v53  ;;  %v601_v34 = vunpack.c.l.b16 %v573_v30  ;;  %1083 = vmatpush.bf16.msrb.mxu2 %v1774_v42  ;;  %v1757_v53 = vld [vmem:[%s2934_s10 + $0x90] sm:$0xf] }
 0x3d2   :  { %v562_v32 = vrot.slane %v558_v10, 4  ;;  %v578_v11 = vrot.slane %v558_v10, 6  ;;  %v594_v52 = vpack.c.bf16 %v558_v10, %v558_v10  ;;  %v1775_v10 = vld [vmem:[%s2934_s10 + $0xb8] sm:$0xf0] }
 0x3d4   :  { %v626_v60 = vunpack.c.l.b16 %v594_v52  ;;  %v579_v62 = vsel %vm62_vm14, %v577_v43, %v578_v11  ;;  %v582_v22 = vsel %vm62_vm14, %v578_v11, %v575_v44  ;;  %v566_v63 = vsel %vm400_vm9, %v562_v32, %v559_v28  ;;  %v1933_v11 = vld [vmem:[%s2934_s10 + $0xa4] sm:$0xf] }
 0x3d5   :  { %v586_v7 = vsel %vm90_vm5, %v579_v62, 0.0  ;;  %v583_v8 = vsel %vm87_vm15, %v582_v22, 0.0  ;;  %v567_v14 = vsel %vm425_vm11, %v566_v63, 0.0  ;;  %v563_v16 = vsel %vm400_vm9, %v561_v40, %v562_v32  ;;  %v1901_v40 = vld [vmem:[%s2932_s8] sm:$0xff]  ;;  %v1934_v32 = vld [vmem:[%s2934_s10 + $0xa4] sm:$0xf0] }
 0x3d6   :  { %v628_v12 = vpack.c.b16 %v626_v60, %v625_v56  ;;  %v590_v13 = vpack.c.bf16 %v586_v7, %v586_v7  ;;  %v587_v59 = vpack.c.bf16 %v583_v8, %v583_v8  ;;  %v571_v15 = vpack.c.bf16 %v567_v14, %v567_v14  ;;  %v1931_v60 = vld [vmem:[%s2934_s10 + $0x94] sm:$0xf]  ;;  %v1759_v22 = vld [vmem:[%s2934_s10 + $0x98] sm:$0xf0]  ;;  %v1749_v7 = vld [vmem:[%s2934_s10 + $0x80] sm:$0xf] }
 0x3d7   :  { %v570_v19 = vsel %vm428_vm6, %v563_v16, 0.0  ;;  %vm811_vm14 = vcmp.ge.s32.totalorder %v2083_v5, 8  ;;  %vm810_vm15 = vcmp.ge.s32.totalorder %v2067_v1, 8  ;;  %v1908_v1 = vld [vmem:[%s2932_s8 + $0x38] sm:$0xff]  ;;  %v1907_v5 = vld [vmem:[%s2932_s8 + $0x30] sm:$0xff]  ;;  %v1766_v52 = vor.u32 %v1934_v32, %v1765_v51 }
 0x3d8   :  { %1682 = vmatmul.msk.bf16.gmra.mxu0 %vm629_vm1, %v628_v12  ;;  %v612_v17 = vunpack.c.l.b16 %v590_v13  ;;  %v609_v18 = vunpack.c.l.b16 %v587_v59  ;;  %v599_v23 = vunpack.c.l.b16 %v571_v15  ;;  %v574_v27 = vpack.c.bf16 %v570_v19, %v570_v19  ;;  %744 = vmatpush.bf16.msra.mxu3 %v1908_v1  ;;  %v1930_v8 = vld [vmem:[%s2934_s10 + $0x84] sm:$0xf0]  ;;  %v1929_v63 = vld [vmem:[%s2934_s10 + $0x84] sm:$0xf]  ;;  %v1751_v12 = vld [vmem:[%s2934_s10 + $0x88] sm:$0xf0] }
 0x3d9   :  { %v815_v41 = vsel %vm811_vm14, 1, %v1983_v0  ;;  %v814_v36 = vsel %vm810_vm15, 1, %v1983_v0  ;;  %v1905_v0 = vld [vmem:[%s2932_s8 + $0x20] sm:$0xff]  ;;  %v1770_v56 = vor.u32 %v1933_v11, %v1767_v55  ;;  %1084 = vmatpush.bf16.msrb.mxu2 %v1766_v52  ;;  %v1758_v62 = vor.u32 %v1932_v21, %v1757_v53  ;;  %v1735_v52 = vld [vmem:[%s2934_s10 + $0x68] sm:$0xf0] }
 0x3da   :  { %v614_v28 = vpack.c.b16 %v612_v17, %v611_v61  ;;  %v613_v29 = vpack.c.b16 %v610_v20, %v609_v18  ;;  %v603_v31 = vpack.c.b16 %v600_v25, %v599_v23  ;;  %v602_v35 = vunpack.c.l.b16 %v574_v27  ;;  %v1981_v14 = vld [vmem:[%s2933_s9] ss:$0 sm:$0xff]  ;;  %v1925_v51 = vld [vmem:[%s2934_s10 + $0x64] sm:$0xf]  ;;  %v1725_v53 = vld [vmem:[%s2934_s10 + $0x50] sm:$0xf] }
 0x3db   :  { %v1762_v4 = vor.u32 %v1931_v60, %v1759_v22  ;;  %v1750_v9 = vor.u32 %v1930_v8, %v1749_v7  ;;  %v1754_v13 = vor.u32 %v1929_v63, %v1751_v12  ;;  %v1924_v21 = vld [vmem:[%s2934_s10 + $0x54] sm:$0xf0]  ;;  %v1923_v8 = vld [vmem:[%s2934_s10 + $0x54] sm:$0xf]  ;;  %v1727_v63 = vld [vmem:[%s2934_s10 + $0x58] sm:$0xf0] }
 0x3dc   :  { %617 = vrot.lane.b32.xlu1 %v614_v28, %s1986_s20  ;;  %615 = vrot.lane.b32.xlu0 %v613_v29, %s1986_s20  ;;  %v604_v33 = vpack.c.b16 %v602_v35, %v601_v34 }
 0x3dd   :  { %745 = vmatpush.bf16.msra.mxu3 %v1907_v5  ;;  %1085 = vmatpush.bf16.msrb.mxu2 %v1758_v62 }
 0x3e1   :  { %746 = vmatpush.bf16.msra.mxu3 %v1906_v2  ;;  %1086 = vmatpush.bf16.msrb.mxu2 %v1750_v9 }
 0x3e4   :  { %796 = vrot.lane.b32.xlu1 %v553_v49, %s1986_s20  ;;  %792 = vrot.lane.b32.xlu0 %v2372_v24, %s1986_s20  ;;  %v1903_v24 = vld [vmem:[%s2932_s8 + $0x10] sm:$0xff] }
 0x3e5   :  { %747 = vmatpush.bf16.msra.mxu3 %v1905_v0  ;;  %v1935_v49 = vld [vmem:[%s2934_s10 + $0xb4] sm:$0xf] }
 0x3e6   :  { %v1778_v50 = vor.u32 %v1935_v49, %v1775_v10  ;;  %v1733_v10 = vld [vmem:[%s2934_s10 + $0x60] sm:$0xf] }
 0x3e8   :  { %1121 = vmatpush.bf16.msra.mxu0 %v1778_v50  ;;  %v1926_v50 = vld [vmem:[%s2934_s10 + $0x64] sm:$0xf0] }
 0x3e9   :  { %748 = vmatpush.bf16.msra.mxu3 %v1904_v6  ;;  %v1734_v11 = vor.u32 %v1926_v50, %v1733_v10  ;;  %v1701_v50 = vld [vmem:[%s2934_s10 + $0x20] sm:$0xf] }
 0x3ec   :  { %822 = vperm.xlu1 %1976, %v815_v41   ;;  %819 = vperm.xlu0 %1975, %v814_v36  }
 0x3ed   :  { %749 = vmatpush.bf16.msra.mxu3 %v1903_v24  ;;  %1122 = vmatpush.bf16.msra.mxu0 %v1770_v56 }
 0x3f1   :  { %750 = vmatpush.bf16.msra.mxu3 %v1902_v39  ;;  %1123 = vmatpush.bf16.msra.mxu0 %v1762_v4  ;;  %v1741_v39 = vld [vmem:[%s2934_s10 + $0x70] sm:$0xf]  ;;  %v1738_v4 = vor.u32 %v1925_v51, %v1735_v52  ;;  %v1918_v51 = vld [vmem:[%s2934_s10 + $0x24] sm:$0xf0] }
 0x3f4   :  { %828 = vperm.xlu1 %1976, %v817_v37   ;;  %825 = vperm.xlu0 %1975, %v816_v38  }
 0x3f5   :  { %751 = vmatpush.bf16.msra.mxu3 %v1901_v40  ;;  %1124 = vmatpush.bf16.msra.mxu0 %v1754_v13  ;;  %v1928_v40 = vld [vmem:[%s2934_s10 + $0x74] sm:$0xf0]  ;;  %v1726_v13 = vor.u32 %v1924_v21, %v1725_v53 }
 0x412   :  { %v791_v19 = vpop.permute.xlu2 %790 }
 0x445   :  { %v772_v59 = vpop.f32.mrf.mxu0 }
 0x44d   :  { %v774_v18 = vpop.f32.mrf.mxu0 }
 0x44e   :  { %v616_v43 = vpop.permute.xlu0 %615  ;;  %v618_v45 = vpop.permute.xlu1 %617 }
 0x44f   :  { %v632_v44 = vsel %vm629_vm1, %v603_v31, %v616_v43  ;;  %v636_v46 = vsel %vm629_vm1, %v604_v33, %v618_v45  ;;  %v795_v43 = vpop.permute.xlu2 %794  ;;  %v1927_v45 = vld [vmem:[%s2934_s10 + $0x74] sm:$0xf] }
 0x450   :  { %752 = vmatmul.bf16.vlgmr.msra.gmra.mxu3 %v632_v44  ;;  %v1742_v44 = vor.u32 %v1928_v40, %v1741_v39  ;;  %v1711_v39 = vld [vmem:[%s2934_s10 + $0x38] sm:$0xf0] }
 0x452   :  { %1060 = vmatpush.bf16.msrb.mxu1 %v1742_v44 }
 0x455   :  { %v777_v41 = vpop.f32.mrf.mxu0 }
 0x456   :  { %v793_v16 = vpop.permute.xlu0 %792  ;;  %v2500_v61 = vpop.permute.xlu1 %796  ;;  %1061 = vmatpush.bf16.msrb.mxu1 %v1734_v11 }
 0x45a   :  { %1062 = vmatpush.bf16.msrb.mxu1 %v1726_v13 }
 0x45d   :  { %v779_v60 = vpop.f32.mrf.mxu0 }
 0x45e   :  { %v2502_v29 = vpop.permute.xlu0 %819  ;;  %v2506_v35 = vpop.permute.xlu1 %822 }
 0x45f   :  { %vm831_vm4 = vcmp.eq.s32.totalorder %v2506_v35, 1  ;;  %vm830_vm7 = vcmp.eq.s32.totalorder %v2502_v29, 1 }
 0x460   :  { %757 = vmatmul.bf16.gmra.mxu3 %v636_v46  ;;  %v1743_v46 = vld [vmem:[%s2934_s10 + $0x78] sm:$0xf0] }
 0x461   :  { %v1746_v42 = vor.u32 %v1927_v45, %v1743_v46 }
 0x463   :  { %1098 = vmatpush.bf16.msrb.mxu3 %v1746_v42 }
 0x466   :  { %v2526_v47 = vpop.permute.xlu0 %825  ;;  %v2540_v55 = vpop.permute.xlu1 %828 }
 0x467   :  { %vm832_vm3 = vcmp.eq.s32.totalorder %v2526_v47, 1  ;;  %vm833_vm5 = vcmp.eq.s32.totalorder %v2540_v55, 1  ;;  %1099 = vmatpush.bf16.msrb.mxu3 %v1738_v4  ;;  %v1703_v4 = vld [vmem:[%s2934_s10 + $0x28] sm:$0xf0] }
 0x4d3   :  { %v753_v20 = vpop.f32.mrf.mxu3 }
 0x4d4   :  { %v754_v15 = vadd.f32 %v1981_v14, %v753_v20  ;;  %v1922_v20 = vld [vmem:[%s2934_s10 + $0x44] sm:$0xf0] }
 0x4d6   :  { %v773_v30 = vadd.f32 %v772_v59, %v754_v15 }
 0x4d8   :  { %v782_v17 = vmax.f32 %v773_v30, 0.0  ;;  %v1730_v30 = vor.u32 %v1923_v8, %v1727_v63  ;;  %v1702_v8 = vor.u32 %v1918_v51, %v1701_v50  ;;  %v1949_v50 = vld [vmem:[%s2935_s12 + $0x60] sm:$0xff]  ;;  %v1940_v51 = vld [vmem:[%s2935_s12 + $0x18] sm:$0xff] }
 0x4da   :  { %v802_v25 = vadd.f32 %v791_v19, %v782_v17  ;;  %1100 = vmatpush.bf16.msrb.mxu3 %v1730_v30 }
 0x4db   :  { %v755_v23 = vpop.f32.mrf.mxu3 }
 0x4dc   :  { %v756_v27 = vadd.f32 %v1981_v14, %v755_v23  ;;  %v2504_v31 = vmax.f32 %v802_v25, 0.0  ;;  %v1921_v23 = vld [vmem:[%s2934_s10 + $0x44] sm:$0xf]  ;;  %v1719_v25 = vld [vmem:[%s2934_s10 + $0x48] sm:$0xf0] }
 0x4de   :  { %v775_v28 = vadd.f32 %v774_v18, %v756_v27  ;;  %v858_v1 = vpack.c.bf16 %v2504_v31, %v2504_v31  ;;  %v842_v12 = vrot.slane %v2504_v31, 4  ;;  %v835_v15 = vsel %vm831_vm4, %v2504_v31, 0.0 }
 0x4e0   :  { %v783_v34 = vmax.f32 %v775_v28, 0.0  ;;  %v890_v6 = vunpack.c.l.b16 %v858_v1  ;;  %v1722_v1 = vor.u32 %v1921_v23, %v1719_v25 }
 0x4e2   :  { %v803_v33 = vadd.f32 %v793_v16, %v783_v34  ;;  %1101 = vmatpush.bf16.msrb.mxu3 %v1722_v1 }
 0x4e3   :  { %v758_v36 = vpop.f32.mrf.mxu3 }
 0x4e4   :  { %v2508_v37 = vmax.f32 %v803_v33, 0.0  ;;  %v759_v38 = vadd.f32 %v1981_v14, %v758_v36  ;;  %v1709_v33 = vld [vmem:[%s2934_s10 + $0x30] sm:$0xf]  ;;  %v839_v36 = vpack.c.bf16 %v835_v15, %v835_v15  ;;  %v1915_v15 = vld [vmem:[%s2934_s10 + $0x14] sm:$0xf] }
 0x4e6   :  { %v778_v5 = vadd.f32 %v777_v41, %v759_v38  ;;  %v859_v2 = vpack.c.bf16 %v2508_v37, %v2508_v37  ;;  %v843_v62 = vrot.slane %v2508_v37, 4  ;;  %v836_v9 = vsel %vm832_vm3, %v2508_v37, 0.0  ;;  %v1920_v41 = vld [vmem:[%s2934_s10 + $0x34] sm:$0xf0] }
 0x4e7   :  { %v840_v18 = vpack.c.bf16 %v836_v9, %v836_v9  ;;  %v1710_v44 = vor.u32 %v1920_v41, %v1709_v33  ;;  %v1693_v9 = vld [vmem:[%s2934_s10 + $0x10] sm:$0xf] }
 0x4e8   :  { %v784_v0 = vmax.f32 %v778_v5, 0.0  ;;  %v891_v24 = vunpack.c.l.b16 %v859_v2  ;;  %v848_v16 = vsel %vm400_vm9, %v842_v12, %v843_v62 }
 0x4e9   :  { %v2601_v5 = vunpack.c.l.b16 %v840_v18  ;;  %v1685_v18 = vld [vmem:[%s2934_s10] sm:$0xf] }
 0x4ea   :  { %v804_v48 = vadd.f32 %v795_v43, %v784_v0  ;;  %v894_v49 = vpack.c.b16 %v891_v24, %v890_v6  ;;  %v1919_v24 = vld [vmem:[%s2934_s10 + $0x34] sm:$0xf] }
 0x4eb   :  { %v760_v32 = vpop.f32.mrf.mxu3  ;;  %v1714_v11 = vor.u32 %v1919_v24, %v1711_v39  ;;  %v1958_v24 = vld [vmem:[%s2935_s12 + $0xa8] sm:$0xff]  ;;  %v1957_v39 = vld [vmem:[%s2935_s12 + $0xa0] sm:$0xff] }
 0x4ec   :  { %v761_v56 = vadd.f32 %v1981_v14, %v760_v32  ;;  %1779 = vmatmul.msk.bf16.vlgmr.msrb.gmra.mxu2 %vm629_vm1, %v894_v49  ;;  %1781 = vmatmul.msk.bf16.vlgmr.msra.gmra.mxu0 %vm629_vm1, %v894_v49  ;;  %v2552_v22 = vmax.f32 %v804_v48, 0.0  ;;  %v1717_v14 = vld [vmem:[%s2934_s10 + $0x40] sm:$0xf] }
 0x4ed   :  { %v1718_v28 = vor.u32 %v1922_v20, %v1717_v14  ;;  %1102 = vmatpush.bf16.msrb.mxu3 %v1714_v11 }
 0x4ee   :  { %v780_v7 = vadd.f32 %v779_v60, %v761_v56  ;;  %v837_v17 = vsel %vm833_vm5, %v2552_v22, 0.0  ;;  %v860_v34 = vpack.c.bf16 %v2552_v22, %v2552_v22  ;;  %v844_v38 = vrot.slane %v2552_v22, 4  ;;  %v1917_v22 = vld [vmem:[%s2934_s10 + $0x24] sm:$0xf] }
 0x4ef   :  { %v841_v27 = vpack.c.bf16 %v837_v17, %v837_v17  ;;  %1063 = vmatpush.bf16.msrb.mxu1 %v1718_v28  ;;  %v867_v56 = vunpack.c.l.b16 %v839_v36  ;;  %v1687_v28 = vld [vmem:[%s2934_s10 + $0x8] sm:$0xf0] }
 0x4f0   :  { %v785_v59 = vmax.f32 %v780_v7, 0.0  ;;  %v892_v48 = vunpack.c.l.b16 %v860_v34  ;;  %v847_v60 = vsel %vm400_vm9, %v843_v62, %v844_v38 }
 0x4f1   :  { %v2603_v2 = vunpack.c.l.b16 %v841_v27  ;;  %v852_v13 = vsel %vm427_vm13, %v847_v60, 0.0  ;;  %v1913_v27 = vld [vmem:[%s2934_s10 + $0x4] sm:$0xf]  ;;  %v1947_v60 = vld [vmem:[%s2935_s12 + $0x50] sm:$0xff] }
 0x4f2   :  { %v805_v19 = vadd.f32 %v2500_v61, %v785_v59  ;;  %v851_v61 = vsel %vm426_vm10, %v848_v16, 0.0  ;;  %v1706_v59 = vor.u32 %v1917_v22, %v1703_v4  ;;  %v1695_v16 = vld [vmem:[%s2934_s10 + $0x18] sm:$0xf0]  ;;  %v856_v17 = vpack.c.bf16 %v852_v13, %v852_v13  ;;  %v1938_v4 = vld [vmem:[%s2935_s12 + $0x8] sm:$0xff] }
 0x4f3   :  { %v855_v43 = vpack.c.bf16 %v851_v61, %v851_v61  ;;  %v871_v46 = vpack.c.b16 %v2603_v2, %v2601_v5  ;;  %1064 = vmatpush.bf16.msrb.mxu1 %v1710_v44  ;;  %v1698_v23 = vor.u32 %v1915_v15, %v1695_v16  ;;  %v1690_v61 = vor.u32 %v1913_v27, %v1687_v28  ;;  %v1956_v5 = vld [vmem:[%s2935_s12 + $0x98] sm:$0xff]  ;;  %v1943_v44 = vld [vmem:[%s2935_s12 + $0x30] sm:$0xff] }
 0x4f4   :  { %v809_v31 = vmax.f32 %v805_v19, 0.0  ;;  %v1914_v19 = vld [vmem:[%s2934_s10 + $0x4] sm:$0xf0]  ;;  %1103 = vmatpush.bf16.msrb.mxu3 %v1706_v59  ;;  %v878_v34 = vunpack.c.l.b16 %v856_v17  ;;  %v1944_v2 = vld [vmem:[%s2935_s12 + $0x38] sm:$0xff] }
 0x4f5   :  { %v877_v62 = vunpack.c.l.b16 %v855_v43  ;;  %v1955_v43 = vld [vmem:[%s2935_s12 + $0x90] sm:$0xff] }
 0x4f6   :  { %v845_v0 = vrot.slane %v809_v31, 4  ;;  %v861_v6 = vpack.c.bf16 %v809_v31, %v809_v31  ;;  %v834_v40 = vsel %vm830_vm7, %v809_v31, 0.0  ;;  %v1686_v31 = vor.u32 %v1914_v19, %v1685_v18 }
 0x4f7   :  { %v838_v45 = vpack.c.bf16 %v834_v40, %v834_v40  ;;  %1065 = vmatpush.bf16.msrb.mxu1 %v1702_v8  ;;  %v1952_v40 = vld [vmem:[%s2935_s12 + $0x78] sm:$0xff]  ;;  %v1937_v8 = vld [vmem:[%s2935_s12] sm:$0xff] }
 0x4f8   :  { %v893_v49 = vunpack.c.l.b16 %v861_v6  ;;  %v849_v42 = vsel %vm400_vm9, %v845_v0, %v842_v12  ;;  %v846_v10 = vsel %vm400_vm9, %v844_v38, %v845_v0  ;;  %v1916_v12 = vld [vmem:[%s2934_s10 + $0x14] sm:$0xf0]  ;;  %1104 = vmatpush.bf16.msrb.mxu3 %v1698_v23  ;;  %v1959_v0 = vld [vmem:[%s2935_s12 + $0xb0] sm:$0xff]  ;;  %1419 = vmatpush.bf16.msra.mxu2 %v1952_v40 }
 0x4f9   :  { %v850_v32 = vsel %vm425_vm11, %v849_v42, 0.0  ;;  %v866_v52 = vunpack.c.l.b16 %v838_v45  ;;  %v853_v7 = vsel %vm428_vm6, %v846_v10, 0.0  ;;  %v1694_v30 = vor.u32 %v1916_v12, %v1693_v9  ;;  %v1960_v38 = vld [vmem:[%s2935_s12 + $0xb8] sm:$0xff]  ;;  %v1951_v45 = vld [vmem:[%s2935_s12 + $0x70] sm:$0xff]  ;;  %v1953_v42 = vld [vmem:[%s2935_s12 + $0x80] sm:$0xff] }
 0x4fa   :  { %v895_v53 = vpack.c.b16 %v893_v49, %v892_v48  ;;  %v854_v21 = vpack.c.bf16 %v850_v32, %v850_v32  ;;  %v857_v20 = vpack.c.bf16 %v853_v7, %v853_v7  ;;  %1438 = vmatpush.bf16.msrb.mxu0 %v1960_v38  ;;  %v1942_v48 = vld [vmem:[%s2935_s12 + $0x28] sm:$0xff]  ;;  %v1941_v10 = vld [vmem:[%s2935_s12 + $0x20] sm:$0xff] }
 0x4fb   :  { %v870_v63 = vpack.c.b16 %v867_v56, %v866_v52  ;;  %1066 = vmatpush.bf16.msrb.mxu1 %v1694_v30  ;;  %v1950_v49 = vld [vmem:[%s2935_s12 + $0x68] sm:$0xff]  ;;  %v2728_v32 = vld [vmem:[%s2936_s11] sm:$0x3]  ;;  %v1948_v52 = vld [vmem:[%s2935_s12 + $0x58] sm:$0xff] }
 0x4fc   :  { %1780 = vmatmul.msk.bf16.gmra.mxu2 %vm629_vm1, %v895_v53  ;;  %1782 = vmatmul.msk.bf16.gmra.mxu0 %vm629_vm1, %v895_v53  ;;  %v876_v37 = vunpack.c.l.b16 %v854_v21  ;;  %v879_v25 = vunpack.c.l.b16 %v857_v20  ;;  %v930_v56 = vperm.slane %v2728_v32, 0  ;;  %v1939_v53 = vld [vmem:[%s2935_s12 + $0x10] sm:$0xff]  ;;  %v1946_v7 = vld [vmem:[%s2935_s12 + $0x48] sm:$0xff] }
 0x4fd   :  { %1105 = vmatpush.bf16.msrb.mxu3 %v1690_v61  ;;  %1420 = vmatpush.bf16.msra.mxu2 %v1951_v45 }
 0x4fe   :  { %v880_v14 = vpack.c.b16 %v877_v62, %v876_v37  ;;  %v881_v33 = vpack.c.b16 %v879_v25, %v878_v34  ;;  %1439 = vmatpush.bf16.msrb.mxu0 %v1959_v0  ;;  %v1945_v62 = vld [vmem:[%s2935_s12 + $0x40] sm:$0xff] }
 0x4ff   :  { %1067 = vmatpush.bf16.msrb.mxu1 %v1686_v31 }
 0x500   :  { %882 = vrot.lane.b32.xlu2 %v880_v14, %s1986_s20 }
 0x501   :  { %1961 = vmatpush.bf16.msra.mxu3 %v1960_v38  ;;  %1421 = vmatpush.bf16.msra.mxu2 %v1950_v49 }
 0x502   :  { %1440 = vmatpush.bf16.msrb.mxu0 %v1958_v24 }
 0x503   :  { %1400 = vmatpush.bf16.msra.mxu1 %v1944_v2 }
 0x505   :  { %1962 = vmatpush.bf16.msra.mxu3 %v1959_v0  ;;  %1422 = vmatpush.bf16.msra.mxu2 %v1949_v50 }
 0x506   :  { %1441 = vmatpush.bf16.msrb.mxu0 %v1957_v39 }
 0x507   :  { %1401 = vmatpush.bf16.msra.mxu1 %v1943_v44 }
 0x508   :  { %884 = vrot.lane.b32.xlu2 %v881_v33, %s1986_s20 }
 0x509   :  { %1963 = vmatpush.bf16.msra.mxu3 %v1958_v24  ;;  %1423 = vmatpush.bf16.msra.mxu2 %v1948_v52 }
 0x50a   :  { %1442 = vmatpush.bf16.msrb.mxu0 %v1956_v5 }
 0x50b   :  { %1402 = vmatpush.bf16.msra.mxu1 %v1942_v48 }
 0x50d   :  { %1964 = vmatpush.bf16.msra.mxu3 %v1957_v39  ;;  %1424 = vmatpush.bf16.msra.mxu2 %v1947_v60 }
 0x50e   :  { %1443 = vmatpush.bf16.msrb.mxu0 %v1955_v43 }
 0x50f   :  { %1403 = vmatpush.bf16.msra.mxu1 %v1941_v10 }
 0x511   :  { %1965 = vmatpush.bf16.msra.mxu3 %v1956_v5  ;;  %1425 = vmatpush.bf16.msra.mxu2 %v1946_v7 }
 0x513   :  { %1404 = vmatpush.bf16.msra.mxu1 %v1940_v51 }
 0x515   :  { %1966 = vmatpush.bf16.msra.mxu3 %v1955_v43  ;;  %1426 = vmatpush.bf16.msra.mxu2 %v1945_v62 }
 0x517   :  { %1405 = vmatpush.bf16.msra.mxu1 %v1939_v53 }
 0x51b   :  { %1406 = vmatpush.bf16.msra.mxu1 %v1938_v4 }
 0x51f   :  { %1407 = vmatpush.bf16.msra.mxu1 %v1937_v8 }
 0x55a   :  { %v883_v41 = vpop.permute.xlu2 %882 }
 0x55b   :  { %v898_v36 = vsel %vm629_vm1, %v870_v63, %v883_v41 }
 0x55c   :  { %1068 = vmatmul.bf16.vlgmr.msrb.gmra.mxu1 %v898_v36  ;;  %1106 = vmatmul.bf16.vlgmr.msrb.gmra.mxu3 %v898_v36 }
 0x562   :  { %v885_v1 = vpop.permute.xlu2 %884 }
 0x563   :  { %v902_v6 = vsel %vm629_vm1, %v871_v46, %v885_v1  ;;  %v1954_v46 = vld [vmem:[%s2935_s12 + $0x88] sm:$0xff] }
 0x564   :  { %1444 = vmatpush.bf16.msrb.mxu0 %v1954_v46  ;;  %1967 = vmatpush.bf16.msra.mxu3 %v1954_v46 }
 0x568   :  { %1445 = vmatpush.bf16.msrb.mxu0 %v1953_v42  ;;  %1968 = vmatpush.bf16.msra.mxu3 %v1953_v42 }
 0x569   :  { %v1126_v26 = vpop.f32.mrf.mxu0 }
 0x56c   :  { %1073 = vmatmul.bf16.gmra.mxu1 %v902_v6  ;;  %1111 = vmatmul.bf16.gmra.mxu3 %v902_v6 }
 0x56f   :  { %v1088_v11 = vpop.f32.mrf.mxu2 }
 0x577   :  { %v1090_v37 = vpop.f32.mrf.mxu2 }
 0x57f   :  { %v1093_v16 = vpop.f32.mrf.mxu2 }
 0x587   :  { %v1095_v33 = vpop.f32.mrf.mxu2 }
 0x5d9   :  { %v1069_v21 = vpop.f32.mrf.mxu1 }
 0x5da   :  { %v1070_v22 = vadd.f32 %v1069_v21, %v930_v56 }
 0x5dc   :  { %v1089_v63 = vadd.f32 %v1088_v11, %v1070_v22 }
 0x5de   :  { %v1136_v12 = vmax.f32 %v1089_v63, 0.0 }
 0x5e0   :  { %v1164_v14 = vpack.c.bf16 %v1136_v12, %v1136_v12  ;;  %v1148_v31 = vrot.slane %v1136_v12, 4  ;;  %v1141_v41 = vsel %vm831_vm4, %v1136_v12, 0.0  ;;  %v1128_v12 = vpop.f32.mrf.mxu0 }
 0x5e1   :  { %v1071_v9 = vpop.f32.mrf.mxu1  ;;  %v1145_v6 = vpack.c.bf16 %v1141_v41, %v1141_v41 }
 0x5e2   :  { %v1072_v13 = vadd.f32 %v1071_v9, %v930_v56  ;;  %v1196_v17 = vunpack.c.l.b16 %v1164_v14 }
 0x5e3   :  { %v1173_v46 = vunpack.c.l.b16 %v1145_v6 }
 0x5e4   :  { %v1091_v59 = vadd.f32 %v1090_v37, %v1072_v13  ;;  %v1107_v13 = vpop.f32.mrf.mxu3 }
 0x5e6   :  { %v1137_v20 = vmax.f32 %v1091_v59, 0.0 }
 0x5e8   :  { %v1165_v15 = vpack.c.bf16 %v1137_v20, %v1137_v20  ;;  %v1149_v27 = vrot.slane %v1137_v20, 4  ;;  %v1142_v3 = vsel %vm832_vm3, %v1137_v20, 0.0  ;;  %v1131_v59 = vpop.f32.mrf.mxu0 }
 0x5e9   :  { %v1074_v30 = vpop.f32.mrf.mxu1  ;;  %v1146_v22 = vpack.c.bf16 %v1142_v3, %v1142_v3 }
 0x5ea   :  { %v1197_v18 = vunpack.c.l.b16 %v1165_v15  ;;  %v1075_v19 = vadd.f32 %v1074_v30, %v930_v56  ;;  %v1154_v38 = vsel %vm400_vm9, %v1148_v31, %v1149_v27  ;;  %v931_v15 = vperm.slane %v2728_v32, 1 }
 0x5eb   :  { %v1157_v24 = vsel %vm426_vm10, %v1154_v38, 0.0  ;;  %v1174_v63 = vunpack.c.l.b16 %v1146_v22 }
 0x5ec   :  { %v1200_v23 = vpack.c.b16 %v1197_v18, %v1196_v17  ;;  %v1094_v25 = vadd.f32 %v1093_v16, %v1075_v19  ;;  %v1161_v45 = vpack.c.bf16 %v1157_v24, %v1157_v24  ;;  %v1109_v57 = vpop.f32.mrf.mxu3 }
 0x5ee   :  { %1446 = vmatmul.bf16.vlgmr.msrb.gmra.mxu0 %v1200_v23  ;;  %v1138_v34 = vmax.f32 %v1094_v25, 0.0  ;;  %v1185_v50 = vunpack.c.l.b16 %v1161_v45  ;;  %v1108_v23 = vadd.f32 %v1107_v13, %v931_v15 }
 0x5f0   :  { %v1166_v1 = vpack.c.bf16 %v1138_v34, %v1138_v34  ;;  %v1150_v51 = vrot.slane %v1138_v34, 4  ;;  %v1143_v52 = vsel %vm833_vm5, %v1138_v34, 0.0  ;;  %v1133_v14 = vpop.f32.mrf.mxu0 }
 0x5f1   :  { %v1076_v28 = vpop.f32.mrf.mxu1  ;;  %v1147_v21 = vpack.c.bf16 %v1143_v52, %v1143_v52 }
 0x5f2   :  { %v1077_v61 = vadd.f32 %v1076_v28, %v930_v56  ;;  %v1198_v43 = vunpack.c.l.b16 %v1166_v1  ;;  %v1153_v53 = vsel %vm400_vm9, %v1149_v27, %v1150_v51  ;;  %v1127_v28 = vadd.f32 %v1126_v26, %v1108_v23 }
 0x5f3   :  { %v1158_v4 = vsel %vm427_vm13, %v1153_v53, 0.0  ;;  %v1175_v55 = vunpack.c.l.b16 %v1147_v21 }
 0x5f4   :  { %v1096_v36 = vadd.f32 %v1095_v33, %v1077_v61  ;;  %v1162_v8 = vpack.c.bf16 %v1158_v4, %v1158_v4  ;;  %v1112_v16 = vpop.f32.mrf.mxu3 }
 0x5f5   :  { %v1177_v62 = vpack.c.b16 %v1175_v55, %v1174_v63 }
 0x5f6   :  { %v1139_v0 = vmax.f32 %v1096_v36, 0.0  ;;  %v1186_v9 = vunpack.c.l.b16 %v1162_v8  ;;  %v1110_v36 = vadd.f32 %v1109_v57, %v931_v15 }
 0x5f8   :  { %v1140_v39 = vsel %vm830_vm7, %v1139_v0, 0.0  ;;  %v1151_v5 = vrot.slane %v1139_v0, 4  ;;  %v1167_v2 = vpack.c.bf16 %v1139_v0, %v1139_v0  ;;  %v1129_v24 = vadd.f32 %v1128_v12, %v1110_v36 }
 0x5f9   :  { %v1144_v40 = vpack.c.bf16 %v1140_v39, %v1140_v39 }
 0x5fa   :  { %v1199_v44 = vunpack.c.l.b16 %v1167_v2  ;;  %v1155_v35 = vsel %vm400_vm9, %v1151_v5, %v1148_v31  ;;  %v1152_v56 = vsel %vm400_vm9, %v1150_v51, %v1151_v5 }
 0x5fb   :  { %v1172_v48 = vunpack.c.l.b16 %v1144_v40  ;;  %v1156_v49 = vsel %vm425_vm11, %v1155_v35, 0.0  ;;  %v1159_v60 = vsel %vm428_vm6, %v1152_v56, 0.0 }
 0x5fc   :  { %v1201_v42 = vpack.c.b16 %v1199_v44, %v1198_v43  ;;  %v1160_v58 = vpack.c.bf16 %v1156_v49, %v1156_v49  ;;  %v1163_v7 = vpack.c.bf16 %v1159_v60, %v1159_v60  ;;  %v1114_v33 = vpop.f32.mrf.mxu3  ;;  %v1113_v44 = vadd.f32 %v1112_v16, %v931_v15 }
 0x5fd   :  { %v1176_v10 = vpack.c.b16 %v1173_v46, %v1172_v48 }
 0x5fe   :  { %1451 = vmatmul.bf16.vlgmr.msra.gmra.mxu3 %v1201_v42  ;;  %v1184_v29 = vunpack.c.l.b16 %v1160_v58  ;;  %v1187_v37 = vunpack.c.l.b16 %v1163_v7  ;;  %v1132_v49 = vadd.f32 %v1131_v59, %v1113_v44 }
 0x5ff   :  { %1408 = vmatmul.bf16.vlgmr.msra.gmra.mxu1 %v1176_v10 }
 0x600   :  { %v1188_v11 = vpack.c.b16 %v1185_v50, %v1184_v29  ;;  %v1189_v47 = vpack.c.b16 %v1187_v37, %v1186_v9  ;;  %v1115_v50 = vadd.f32 %v1114_v33, %v931_v15 }
 0x602   :  { %1427 = vmatmul.bf16.vlgmr.msra.gmra.mxu2 %v1188_v11  ;;  %v1134_v3 = vadd.f32 %v1133_v14, %v1115_v50 }
 0x60f   :  { %1413 = vmatmul.bf16.gmra.mxu1 %v1177_v62 }
 0x612   :  { %1432 = vmatmul.bf16.gmra.mxu2 %v1189_v47 }
 0x66b   :  { %v1447_v30 = vpop.f32.mrf.mxu0 }
 0x673   :  { %v1449_v0 = vpop.f32.mrf.mxu0 }
 0x67c   :  { %v1409_v20 = vpop.f32.mrf.mxu1 }
 0x67d   :  { %v1410_v17 = vadd.f32 %v1982_v54, %v1409_v20 }
 0x681   :  { %v1452_v40 = vpop.f32.mrf.mxu3 }
 0x684   :  { %v1411_v18 = vpop.f32.mrf.mxu1 }
 0x685   :  { %v1428_v19 = vpop.f32.mrf.mxu2  ;;  %v1412_v34 = vadd.f32 %v1982_v54, %v1411_v18 }
 0x686   :  { %v1429_v25 = vadd.f32 %v1428_v19, %v1410_v17 }
 0x688   :  { %v1448_v27 = vadd.f32 %v1447_v30, %v1429_v25 }
 0x689   :  { %v1454_v52 = vpop.f32.mrf.mxu3 }
 0x68a   :  { %v1457_v31 = vmax.f32 %v1448_v27, 0.0 }
 0x68c   :  { %v1461_v61 = vadd.f32 %v1457_v31, %v1127_v28  ;;  %v1414_v6 = vpop.f32.mrf.mxu1 }
 0x68d   :  { %v1430_v41 = vpop.f32.mrf.mxu2  ;;  %v1415_v5 = vadd.f32 %v1982_v54, %v1414_v6 }
 0x68e   :  { %v1431_v38 = vadd.f32 %v1430_v41, %v1412_v34  ;;  %v1465_v1 = vmax.f32 %v1461_v61, 0.0 }
 0x690   :  { %v1450_v32 = vadd.f32 %v1449_v0, %v1431_v38  ;;  %1469 = vxpose.xlu0.b32.start [1/4] (short) %v1465_v1, 128 }
 0x692   :  { %v1458_v39 = vmax.f32 %v1450_v32, 0.0 }
 0x694   :  { %v1462_v2 = vadd.f32 %v1458_v39, %v1129_v24  ;;  %v1416_v48 = vpop.f32.mrf.mxu1 }
 0x695   :  { %v1433_v43 = vpop.f32.mrf.mxu2  ;;  %v1417_v58 = vadd.f32 %v1982_v54, %v1416_v48 }
 0x696   :  { %v1466_v35 = vmax.f32 %v1462_v2, 0.0  ;;  %v1434_v45 = vadd.f32 %v1433_v43, %v1415_v5 }
 0x698   :  { %v1453_v46 = vadd.f32 %v1452_v40, %v1434_v45  ;;  %1470 = vxpose.xlu0.b32.cont [2/4] (short) %v1466_v35, 128 }
 0x69a   :  { %v1459_v42 = vmax.f32 %v1453_v46, 0.0 }
 0x69c   :  { %v1463_v10 = vadd.f32 %v1459_v42, %v1132_v49 }
 0x69d   :  { %v1435_v29 = vpop.f32.mrf.mxu2 }
 0x69e   :  { %v1467_v51 = vmax.f32 %v1463_v10, 0.0  ;;  %v1436_v11 = vadd.f32 %v1435_v29, %v1417_v58 }
 0x6a0   :  { %v1455_v56 = vadd.f32 %v1454_v52, %v1436_v11  ;;  %1471 = vxpose.xlu0.b32.cont [3/4] (short) %v1467_v51, 128 }
 0x6a2   :  { %v1460_v53 = vmax.f32 %v1455_v56, 0.0 }
 0x6a4   :  { %v1464_v21 = vadd.f32 %v1460_v53, %v1134_v3 }
 0x6a6   :  { %v1468_v60 = vmax.f32 %v1464_v21, 0.0 }
 0x6a8   :  { %1472 = vxpose.xlu0.b32.end [4/4] (short) %v1468_v60, 128 }
 0x734   :  { %v1485_v22 = vpop.trf.xlu0 }
 0x735   :  { %1502 = vst.msk [vmem:[%s2938_s14] sm:$0xff] %vm1501_vm8, %v1485_v22  ;;  %1534 = vrot.lane.b32.xlu1 %v1485_v22, %s1987_s0 }
 0x73c   :  { %v1486_v4 = vpop.trf.xlu0 }
 0x73d   :  { %1503 = vst.msk [vmem:[%s2938_s14 + $0x8] sm:$0xff] %vm1501_vm8, %v1486_v4  ;;  %1536 = vrot.lane.b32.xlu2 %v1486_v4, %s1987_s0 }
 0x744   :  { %v1487_v7 = vpop.trf.xlu0 }
 0x745   :  { %1504 = vst.msk [vmem:[%s2938_s14 + $0x10] sm:$0xff] %vm1501_vm8, %v1487_v7  ;;  %1538 = vrot.lane.b32.xlu1 %v1487_v7, %s1987_s0 }
 0x74c   :  { %v1488_v55 = vpop.trf.xlu0 }
 0x74d   :  { %1505 = vst.msk [vmem:[%s2938_s14 + $0x18] sm:$0xff] %vm1501_vm8, %v1488_v55  ;;  %1540 = vrot.lane.b32.xlu2 %v1488_v55, %s1987_s0 }
 0x754   :  { %v1489_v8 = vpop.trf.xlu0 }
 0x755   :  { %1506 = vst.msk [vmem:[%s2938_s14 + $0x20] sm:$0xff] %vm1501_vm8, %v1489_v8  ;;  %1542 = vrot.lane.b32.xlu1 %v1489_v8, %s1987_s0 }
 0x75c   :  { %v1490_v63 = vpop.trf.xlu0 }
 0x75d   :  { %1507 = vst.msk [vmem:[%s2938_s14 + $0x28] sm:$0xff] %vm1501_vm8, %v1490_v63  ;;  %1544 = vrot.lane.b32.xlu2 %v1490_v63, %s1987_s0 }
 0x764   :  { %v1491_v37 = vpop.trf.xlu0 }
 0x765   :  { %1508 = vst.msk [vmem:[%s2938_s14 + $0x30] sm:$0xff] %vm1501_vm8, %v1491_v37  ;;  %1546 = vrot.lane.b32.xlu1 %v1491_v37, %s1987_s0 }
 0x76c   :  { %v1492_v62 = vpop.trf.xlu0 }
 0x76d   :  { %1509 = vst.msk [vmem:[%s2938_s14 + $0x38] sm:$0xff] %vm1501_vm8, %v1492_v62  ;;  %1548 = vrot.lane.b32.xlu2 %v1492_v62, %s1987_s0 }
 0x774   :  { %v1493_v9 = vpop.trf.xlu0 }
 0x775   :  { %1510 = vst.msk [vmem:[%s2938_s14 + $0x40] sm:$0xff] %vm1501_vm8, %v1493_v9  ;;  %1550 = vrot.lane.b32.xlu1 %v1493_v9, %s1987_s0 }
 0x77c   :  { %v1494_v47 = vpop.trf.xlu0 }
 0x77d   :  { %1511 = vst.msk [vmem:[%s2938_s14 + $0x48] sm:$0xff] %vm1501_vm8, %v1494_v47  ;;  %1552 = vrot.lane.b32.xlu2 %v1494_v47, %s1987_s0 }
 0x784   :  { %v1495_v26 = vpop.trf.xlu0 }
 0x785   :  { %1512 = vst.msk [vmem:[%s2938_s14 + $0x50] sm:$0xff] %vm1501_vm8, %v1495_v26  ;;  %1554 = vrot.lane.b32.xlu1 %v1495_v26, %s1987_s0 }
 0x78c   :  { %v1496_v12 = vpop.trf.xlu0 }
 0x78d   :  { %1513 = vst.msk [vmem:[%s2938_s14 + $0x58] sm:$0xff] %vm1501_vm8, %v1496_v12  ;;  %1556 = vrot.lane.b32.xlu2 %v1496_v12, %s1987_s0 }
 0x794   :  { %v1497_v13 = vpop.trf.xlu0 }
 0x795   :  { %1514 = vst.msk [vmem:[%s2938_s14 + $0x60] sm:$0xff] %vm1501_vm8, %v1497_v13  ;;  %1558 = vrot.lane.b32.xlu1 %v1497_v13, %s1987_s0 }
 0x797   :  { %v1537_v59 = vpop.permute.xlu2 %1536 }
 0x798   :  { %1880 = vst.msk [vmem:[%s2938_s14 + $0x88] sm:$0xff] %vm1501_vm8, %v1537_v59 }
 0x79c   :  { %v1498_v57 = vpop.trf.xlu0 }
 0x79d   :  { %1515 = vst.msk [vmem:[%s2938_s14 + $0x68] sm:$0xff] %vm1501_vm8, %v1498_v57  ;;  %1560 = vrot.lane.b32.xlu2 %v1498_v57, %s1987_s0 }
 0x7a4   :  { %v1499_v14 = vpop.trf.xlu0 }
 0x7a5   :  { %1516 = vst.msk [vmem:[%s2938_s14 + $0x70] sm:$0xff] %vm1501_vm8, %v1499_v14  ;;  %1562 = vrot.lane.b32.xlu1 %v1499_v14, %s1987_s0 }
 0x7a7   :  { %v1535_v20 = vpop.permute.xlu1 %1534  ;;  %v1541_v54 = vpop.permute.xlu2 %1540 }
 0x7a8   :  { %1879 = vst.msk [vmem:[%s2938_s14 + $0x80] sm:$0xff] %vm1501_vm8, %v1535_v20 }
 0x7a9   :  { %1882 = vst.msk [vmem:[%s2938_s14 + $0x98] sm:$0xff] %vm1501_vm8, %v1541_v54 }
 0x7ac   :  { %v1500_v15 = vpop.trf.xlu0 }
 0x7ad   :  { %1517 = vst.msk [vmem:[%s2938_s14 + $0x78] sm:$0xff] %vm1501_vm8, %v1500_v15  ;;  %1564 = vrot.lane.b32.xlu2 %v1500_v15, %s1987_s0 }
 0x7b7   :  { %v1539_v16 = vpop.permute.xlu1 %1538  ;;  %v1545_v30 = vpop.permute.xlu2 %1544 }
 0x7b8   :  { %1881 = vst.msk [vmem:[%s2938_s14 + $0x90] sm:$0xff] %vm1501_vm8, %v1539_v16 }
 0x7b9   :  { %1884 = vst.msk [vmem:[%s2938_s14 + $0xa8] sm:$0xff] %vm1501_vm8, %v1545_v30 }
 0x7c7   :  { %v1543_v17 = vpop.permute.xlu1 %1542  ;;  %v1549_v18 = vpop.permute.xlu2 %1548 }
 0x7c8   :  { %1883 = vst.msk [vmem:[%s2938_s14 + $0xa0] sm:$0xff] %vm1501_vm8, %v1543_v17 }
 0x7c9   :  { %1886 = vst.msk [vmem:[%s2938_s14 + $0xb8] sm:$0xff] %vm1501_vm8, %v1549_v18 }
 0x7d7   :  { %v1547_v19 = vpop.permute.xlu1 %1546  ;;  %v1553_v23 = vpop.permute.xlu2 %1552 }
 0x7d8   :  { %1885 = vst.msk [vmem:[%s2938_s14 + $0xb0] sm:$0xff] %vm1501_vm8, %v1547_v19 }
 0x7d9   :  { %1888 = vst.msk [vmem:[%s2938_s14 + $0xc8] sm:$0xff] %vm1501_vm8, %v1553_v23 }
 0x7e7   :  { %v1551_v25 = vpop.permute.xlu1 %1550  ;;  %v1557_v27 = vpop.permute.xlu2 %1556 }
 0x7e8   :  { %1887 = vst.msk [vmem:[%s2938_s14 + $0xc0] sm:$0xff] %vm1501_vm8, %v1551_v25 }
 0x7e9   :  { %1890 = vst.msk [vmem:[%s2938_s14 + $0xd8] sm:$0xff] %vm1501_vm8, %v1557_v27 }
 0x7f7   :  { %v1555_v28 = vpop.permute.xlu1 %1554  ;;  %v1561_v31 = vpop.permute.xlu2 %1560 }
 0x7f8   :  { %1889 = vst.msk [vmem:[%s2938_s14 + $0xd0] sm:$0xff] %vm1501_vm8, %v1555_v28 }
 0x7f9   :  { %1892 = vst.msk [vmem:[%s2938_s14 + $0xe8] sm:$0xff] %vm1501_vm8, %v1561_v31 }
 0x807   :  { %v1559_v34 = vpop.permute.xlu1 %1558  ;;  %v1565_v61 = vpop.permute.xlu2 %1564 }
 0x808   :  { %1891 = vst.msk [vmem:[%s2938_s14 + $0xe0] sm:$0xff] %vm1501_vm8, %v1559_v34 }
 0x809   :  { %1894 = vst.msk [vmem:[%s2938_s14 + $0xf8] sm:$0xff] %vm1501_vm8, %v1565_v61 }
 0x817   :  { %v1563_v33 = vpop.permute.xlu1 %1562 }
 0x818   :  { %1893 = vst.msk [vmem:[%s2938_s14 + $0xf0] sm:$0xff] %vm1501_vm8, %v1563_v33 }

</bundles_post_ra>
